<compile_context>
chip_gen: v7x
topology: tpu7x:2x2x1
jax: 0.10.0
libtpu: 0.0.40
codegen_flags: <defaults>
</compile_context>

<pallas_src>
import functools

import jax
import jax.numpy as jnp
from jax.experimental import pallas as pl
from jax.experimental.pallas import tpu as pltpu


def _round_up(n, m):
    return ((n + m - 1) // m) * m


def _num_tensorcores_per_device():
    """Best-effort TC count: v7x exposes 2 TCs per chip, v5e/v6e have 1."""
    try:
        kind = jax.devices()[0].device_kind.lower()
    except Exception:
        return 1
    if "v7" in kind or "7x" in kind:
        return 2
    return 1


def _pick_batch_tile(batch):
    """One grid step per TensorCore (the whole problem easily fits VMEM)."""
    n_tc = _num_tensorcores_per_device()
    tb = _round_up(max(1, -(-batch // n_tc)), 8)
    return max(8, min(512, tb))


def _classifier_kernel(x_ref, w_pre_ref, b_pre_ref, w1_ref, b1_ref,
                       w2_ref, b2_ref, out_ref):
    wdt = w_pre_ref.dtype          # f32 or bf16 (weights-only low precision)
    x = x_ref[...].astype(wdt)

    # --- preprocessing_model: Linear + tanh (EUP) ---
    h0 = jnp.dot(x, w_pre_ref[...], preferred_element_type=jnp.float32)
    h0 = jnp.tanh(h0 + b_pre_ref[...])

    # --- original_model: Linear -> ReLU -> Linear ---
    h1 = jnp.dot(h0.astype(wdt), w1_ref[...], preferred_element_type=jnp.float32)
    h1 = jnp.maximum(h1 + b1_ref[...], 0.0)

    logits = jnp.dot(h1.astype(wdt), w2_ref[...], preferred_element_type=jnp.float32)
    out_ref[...] = (logits + b2_ref[...]).astype(out_ref.dtype)


def prepare_params(params, compute_dtype=jnp.float32):
    """One-time (init-time) weight padding/casting — NOT on the per-call path.

    Hidden/class dims are zero-padded to multiples of 128 (lane-dense, MXU
    friendly); x's feature dim is left untouched.  Weights may be cast to
    bf16 (v6e/v7x DMA + MXU-rate win); biases stay f32 (added post-matmul).
    """
    w_pre, b_pre, w1, b1, w2, b2 = params
    d_in, h_pre = w_pre.shape
    h = w1.shape[1]
    c = w2.shape[1]
    hp_p, h_p, c_p = (_round_up(v, 128) for v in (h_pre, h, c))

    f32 = jnp.float32
    w_pre_p = jnp.pad(w_pre.astype(f32),
                      ((0, 0), (0, hp_p - h_pre))).astype(compute_dtype)
    b_pre_p = jnp.pad(b_pre.astype(f32).reshape(1, -1), ((0, 0), (0, hp_p - h_pre)))
    w1_p = jnp.pad(w1.astype(f32),
                   ((0, hp_p - h_pre), (0, h_p - h))).astype(compute_dtype)
    b1_p = jnp.pad(b1.astype(f32).reshape(1, -1), ((0, 0), (0, h_p - h)))
    w2_p = jnp.pad(w2.astype(f32),
                   ((0, h_p - h), (0, c_p - c))).astype(compute_dtype)
    b2_p = jnp.pad(b2.astype(f32).reshape(1, -1), ((0, 0), (0, c_p - c)))
    return (w_pre_p, b_pre_p, w1_p, b1_p, w2_p, b2_p), c


@functools.partial(jax.jit, static_argnames=("n_classes", "tb"))
def classifier_forward(x, padded_params, *, n_classes, tb):
    """Fused forward pass. x: [B, D_in] f32 -> logits [B, n_classes] f32."""
    w_pre_p, b_pre_p, w1_p, b1_p, w2_p, b2_p = padded_params
    B, d_in = x.shape
    hp_p = w_pre_p.shape[1]
    h_p = w1_p.shape[1]
    c_p = w2_p.shape[1]

    # Batch padding (usually a no-op; fused inside this jit program anyway).
    b_p = _round_up(B, tb)
    xp = x.astype(jnp.float32)
    if b_p != B:
        xp = jnp.pad(xp, ((0, b_p - B), (0, 0)))

    grid = (b_p // tb,)

    # Weights/biases: constant index_map -> VMEM-resident across grid steps.
    const = lambda i: (0, 0)
    in_specs = [
        pl.BlockSpec((tb, d_in), lambda i: (i, 0)),   # x tile (streamed, unpadded K)
        pl.BlockSpec((d_in, hp_p), const),            # W_pre
        pl.BlockSpec((1, hp_p), const),               # b_pre (f32)
        pl.BlockSpec((hp_p, h_p), const),             # W1
        pl.BlockSpec((1, h_p), const),                # b1 (f32)
        pl.BlockSpec((h_p, c_p), const),              # W2
        pl.BlockSpec((1, c_p), const),                # b2 (f32)
    ]
    out_specs = pl.BlockSpec((tb, c_p), lambda i: (i, 0))

    # VMEM budget: (double-buffered) weights + streamed x/out tiles +
    # intermediates, ~2x headroom; tiny vs any generation's VMEM.
    w_item = jnp.dtype(w_pre_p.dtype).itemsize
    weight_bytes = 2 * w_item * (d_in * hp_p + hp_p * h_p + h_p * c_p)
    bias_bytes = 2 * 4 * (hp_p + h_p + c_p)
    stream_bytes = 4 * (2 * tb * d_in + 2 * tb * c_p)
    interm_bytes = 4 * (tb * hp_p + tb * h_p)
    vmem_bytes = int(2 * (weight_bytes + bias_bytes + stream_bytes + interm_bytes))
    vmem_bytes = min(max(vmem_bytes, 4 << 20), 48 << 20)  # fits v7x's 64 MiB

    out_padded = pl.pallas_call(
        _classifier_kernel,
        out_shape=jax.ShapeDtypeStruct((b_p, c_p), jnp.float32),
        grid=grid,
        in_specs=in_specs,
        out_specs=out_specs,
        compiler_params=pltpu.CompilerParams(
            dimension_semantics=("parallel",),
            vmem_limit_bytes=vmem_bytes,
        ),
    )(xp, w_pre_p, b_pre_p, w1_p, b1_p, w2_p, b2_p)

    # Slice happens inside this jit program (no extra dispatch / HBM pass).
    return out_padded[:B, :n_classes]


def classifier_with_preprocessing(x, params, *, compute_dtype=jnp.float32, tb=None):
    """Convenience one-shot API (pads params every call — prefer the
    prepare_params + classifier_forward pattern for repeated calls)."""
    padded, c = prepare_params(params, compute_dtype)
    if tb is None:
        tb = _pick_batch_tile(x.shape[0])
    return classifier_forward(x, padded, n_classes=c, tb=tb)


def init_params(key, d_in, h_pre, h, n_classes):
    """Deterministic synthetic parameter init (uniform, torch-Linear-like scale)."""
    ks = jax.random.split(key, 6)

    def lin(kw, kb, fan_in, fan_out):
        bound = 1.0 / jnp.sqrt(fan_in)
        w = jax.random.uniform(kw, (fan_in, fan_out), jnp.float32, -bound, bound)
        b = jax.random.uniform(kb, (1, fan_out), jnp.float32, -bound, bound)
        return w, b

    w_pre, b_pre = lin(ks[0], ks[1], d_in, h_pre)
    w1, b1 = lin(ks[2], ks[3], h_pre, h)
    w2, b2 = lin(ks[4], ks[5], h, n_classes)
    return (w_pre, b_pre, w1, b1, w2, b2)


def reference_forward(x, params):
    """Pure-JAX reference matching the PyTorch composition semantics."""
    w_pre, b_pre, w1, b1, w2, b2 = params
    h0 = jnp.tanh(x @ w_pre + b_pre)          # preprocessing_model(x)
    h1 = jnp.maximum(h0 @ w1 + b1, 0.0)       # original_model: hidden
    return h1 @ w2 + b2                       # original_model: logits


if __name__ == "__main__":
    B, D_IN, H_PRE, H, C = 512, 32, 32, 64, 10

    key = jax.random.PRNGKey(0)
    k_x, k_p = jax.random.split(key)
    x = jax.random.normal(k_x, (B, D_IN), jnp.float32)
    params = init_params(k_p, D_IN, H_PRE, H, C)

    tb = _pick_batch_tile(B)   # grid=(1,) on v5e/v6e, grid=(2,) on v7x

    # --- f32 path (matches the XLA reference, both at default precision) ---
    padded_f32, c = prepare_params(params, jnp.float32)   # pad ONCE at init
    out = jax.block_until_ready(classifier_forward(x, padded_f32, n_classes=c, tb=tb))

    ref = reference_forward(x, params)
    assert out.shape == (B, C)
    assert jnp.allclose(out, ref, atol=1e-4, rtol=1e-4), "f32 mismatch vs reference"

    # --- bf16 weight variant (v6e/v7x DMA/MXU win); loose tolerance by design ---
    padded_bf16, _ = prepare_params(params, jnp.bfloat16)
    out_bf16 = jax.block_until_ready(
        classifier_forward(x, padded_bf16, n_classes=c, tb=tb))
    assert out_bf16.shape == (B, C)
    assert jnp.allclose(out_bf16, ref, atol=1e-1, rtol=1e-1), "bf16 mismatch vs reference"

    print("KERNEL_OK")
</pallas_src>

<mosaic_0001>
module attributes {stable_mosaic.version = 11 : i64} {
  func.func @_classifier_kernel(%arg0: i32, %arg1: memref<512x32xf32, #tpu.memory_space<vmem>>, %arg2: memref<32x128xf32, #tpu.memory_space<vmem>>, %arg3: memref<1x128xf32, #tpu.memory_space<vmem>>, %arg4: memref<128x128xf32, #tpu.memory_space<vmem>>, %arg5: memref<1x128xf32, #tpu.memory_space<vmem>>, %arg6: memref<128x128xf32, #tpu.memory_space<vmem>>, %arg7: memref<1x128xf32, #tpu.memory_space<vmem>>, %arg8: memref<512x128xf32, #tpu.memory_space<vmem>>) attributes {dimension_semantics = [#tpu.dimension_semantics<parallel>], iteration_bounds = array<i64: 1>, scalar_prefetch = 0 : i64, scratch_operands = 0 : i64, tpu.core_type = #tpu.core_type<tc>, window_params = [{transform_indices = @transform_0, window_bounds = array<i64: 512, 32>}, {pipeline_mode = #tpu.pipeline_mode<synchronous>, transform_indices = @transform_1, window_bounds = array<i64: 32, 128>}, {pipeline_mode = #tpu.pipeline_mode<synchronous>, transform_indices = @transform_2, window_bounds = array<i64: 1, 128>}, {pipeline_mode = #tpu.pipeline_mode<synchronous>, transform_indices = @transform_3, window_bounds = array<i64: 128, 128>}, {pipeline_mode = #tpu.pipeline_mode<synchronous>, transform_indices = @transform_4, window_bounds = array<i64: 1, 128>}, {pipeline_mode = #tpu.pipeline_mode<synchronous>, transform_indices = @transform_5, window_bounds = array<i64: 128, 128>}, {pipeline_mode = #tpu.pipeline_mode<synchronous>, transform_indices = @transform_6, window_bounds = array<i64: 1, 128>}, {transform_indices = @transform_7, window_bounds = array<i64: 512, 128>}]} {
    %c0 = arith.constant 0 : index
    %c0_0 = arith.constant 0 : index
    %0 = vector.load %arg1[%c0, %c0_0] : memref<512x32xf32, #tpu.memory_space<vmem>>, vector<512x32xf32>
    %c0_1 = arith.constant 0 : index
    %c0_2 = arith.constant 0 : index
    %1 = vector.load %arg2[%c0_1, %c0_2] : memref<32x128xf32, #tpu.memory_space<vmem>>, vector<32x128xf32>
    %cst = arith.constant dense<0.000000e+00> : vector<512x128xf32>
    %2 = tpu.matmul %0, %1, %cst {dimension_numbers = #tpu.dot_dimension_numbers<[1], [0], [0], [1], [0, 0, 1, 1], [], []>} : vector<512x32xf32>, vector<32x128xf32>, vector<512x128xf32> -> vector<512x128xf32>
    %c0_3 = arith.constant 0 : index
    %c0_4 = arith.constant 0 : index
    %3 = vector.load %arg3[%c0_3, %c0_4] : memref<1x128xf32, #tpu.memory_space<vmem>>, vector<1x128xf32>
    %4 = vector.broadcast %3 : vector<1x128xf32> to vector<512x128xf32>
    %5 = arith.addf %2, %4 : vector<512x128xf32>
    %6 = math.tanh %5 : vector<512x128xf32>
    %c0_5 = arith.constant 0 : index
    %c0_6 = arith.constant 0 : index
    %7 = vector.load %arg4[%c0_5, %c0_6] : memref<128x128xf32, #tpu.memory_space<vmem>>, vector<128x128xf32>
    %cst_7 = arith.constant dense<0.000000e+00> : vector<512x128xf32>
    %8 = tpu.matmul %6, %7, %cst_7 {dimension_numbers = #tpu.dot_dimension_numbers<[1], [0], [0], [1], [0, 0, 1, 1], [], []>} : vector<512x128xf32>, vector<128x128xf32>, vector<512x128xf32> -> vector<512x128xf32>
    %c0_8 = arith.constant 0 : index
    %c0_9 = arith.constant 0 : index
    %9 = vector.load %arg5[%c0_8, %c0_9] : memref<1x128xf32, #tpu.memory_space<vmem>>, vector<1x128xf32>
    %10 = vector.broadcast %9 : vector<1x128xf32> to vector<512x128xf32>
    %11 = arith.addf %8, %10 : vector<512x128xf32>
    %cst_10 = arith.constant 0.000000e+00 : f32
    %12 = vector.broadcast %cst_10 : f32 to vector<512x128xf32>
    %13 = arith.maximumf %11, %12 : vector<512x128xf32>
    %c0_11 = arith.constant 0 : index
    %c0_12 = arith.constant 0 : index
    %14 = vector.load %arg6[%c0_11, %c0_12] : memref<128x128xf32, #tpu.memory_space<vmem>>, vector<128x128xf32>
    %cst_13 = arith.constant dense<0.000000e+00> : vector<512x128xf32>
    %15 = tpu.matmul %13, %14, %cst_13 {dimension_numbers = #tpu.dot_dimension_numbers<[1], [0], [0], [1], [0, 0, 1, 1], [], []>} : vector<512x128xf32>, vector<128x128xf32>, vector<512x128xf32> -> vector<512x128xf32>
    %c0_14 = arith.constant 0 : index
    %c0_15 = arith.constant 0 : index
    %16 = vector.load %arg7[%c0_14, %c0_15] : memref<1x128xf32, #tpu.memory_space<vmem>>, vector<1x128xf32>
    %17 = vector.broadcast %16 : vector<1x128xf32> to vector<512x128xf32>
    %18 = arith.addf %15, %17 : vector<512x128xf32>
    %c0_16 = arith.constant 0 : index
    %c0_17 = arith.constant 0 : index
    %19 = vector.load %arg8[%c0_16, %c0_17] : memref<512x128xf32, #tpu.memory_space<vmem>>, vector<512x128xf32>
    tpu.vector_store %arg8[%c0_16, %c0_17], %18 {strides = array<i32>} : memref<512x128xf32, #tpu.memory_space<vmem>>, vector<512x128xf32>,
    return
  }
  func.func @transform_0(%arg0: i32) -> (i32, i32) {
    %c0_i32 = arith.constant 0 : i32
    %c0_i32_0 = arith.constant 0 : i32
    return %arg0, %c0_i32 : i32, i32
  }
  func.func @transform_1(%arg0: i32) -> (i32, i32) {
    %c0_i32 = arith.constant 0 : i32
    %c0_i32_0 = arith.constant 0 : i32
    %c0_i32_1 = arith.constant 0 : i32
    return %c0_i32, %c0_i32_0 : i32, i32
  }
  func.func @transform_2(%arg0: i32) -> (i32, i32) {
    %c0_i32 = arith.constant 0 : i32
    %c0_i32_0 = arith.constant 0 : i32
    %c0_i32_1 = arith.constant 0 : i32
    return %c0_i32, %c0_i32_0 : i32, i32
  }
  func.func @transform_3(%arg0: i32) -> (i32, i32) {
    %c0_i32 = arith.constant 0 : i32
    %c0_i32_0 = arith.constant 0 : i32
    %c0_i32_1 = arith.constant 0 : i32
    return %c0_i32, %c0_i32_0 : i32, i32
  }
  func.func @transform_4(%arg0: i32) -> (i32, i32) {
    %c0_i32 = arith.constant 0 : i32
    %c0_i32_0 = arith.constant 0 : i32
    %c0_i32_1 = arith.constant 0 : i32
    return %c0_i32, %c0_i32_0 : i32, i32
  }
  func.func @transform_5(%arg0: i32) -> (i32, i32) {
    %c0_i32 = arith.constant 0 : i32
    %c0_i32_0 = arith.constant 0 : i32
    %c0_i32_1 = arith.constant 0 : i32
    return %c0_i32, %c0_i32_0 : i32, i32
  }
  func.func @transform_6(%arg0: i32) -> (i32, i32) {
    %c0_i32 = arith.constant 0 : i32
    %c0_i32_0 = arith.constant 0 : i32
    %c0_i32_1 = arith.constant 0 : i32
    return %c0_i32, %c0_i32_0 : i32, i32
  }
  func.func @transform_7(%arg0: i32) -> (i32, i32) {
    %c0_i32 = arith.constant 0 : i32
    %c0_i32_0 = arith.constant 0 : i32
    return %arg0, %c0_i32 : i32, i32
  }
}

</mosaic_0001>

<bundles_post_ra>
// kernel: classifier_forward.1
= control target key start
LH: loop header
LB: loop body
LE: loop exit
PB: predicated region body
PF: predicated region fallthrough
CT: control target
= control target key end

     0   :  { %vm101_vm0 = vcmask 261120   ;;  %s3449_s1 = inlined_call_operand.vmem [shape: f32[32,128], index: 1, kind: input, shape index: {}]   ;;  %s3450_s0 = inlined_call_operand.vmem [shape: f32[512,32], index: 0, kind: input, shape index: {}]   ;;  %s3451_s3 = inlined_call_operand.vmem [shape: f32[128,128], index: 3, kind: input, shape index: {}]   ;;  %s3452_s2 = inlined_call_operand.vmem [shape: f32[1,128], index: 2, kind: input, shape index: {}]   ;;  %s3453_s5 = inlined_call_operand.vmem [shape: f32[128,128], index: 5, kind: input, shape index: {}]   ;;  %s3454_s4 = inlined_call_operand.vmem [shape: f32[1,128], index: 4, kind: input, shape index: {}]   ;;  %s3455_s6 = inlined_call_operand.vmem [shape: f32[1,128], index: 6, kind: input, shape index: {}]   ;;  %s3456_s7 = inlined_call_operand.vmem [shape: f32[512,128], index: 7, kind: output, shape index: {}]  }
   0x1   :  { %v90_v0 = vld [vmem:[%s3449_s1] sm:$0xff]  ;;  %v91_v1 = vld [vmem:[%s3449_s1 + $0x8] sm:$0xff]  ;;  %v92_v2 = vld [vmem:[%s3449_s1 + $0x10] sm:$0xff] }
   0x2   :  { %v2346_v3 = vpack.c.bf16 %v91_v1, %v90_v0  ;;  %v93_v4 = vld [vmem:[%s3449_s1 + $0x18] sm:$0xff]  ;;  %v26_v5 = vld [vmem:[%s3450_s0] sm:$0xff]  ;;  %v27_v7 = vld [vmem:[%s3450_s0 + $0x8] sm:$0xff] }
   0x3   :  { %v2350_v6 = vpack.c.bf16 %v93_v4, %v92_v2  ;;  %1994 = vmatprep.mubr.msk.f32.mxu0 %vm101_vm0, %v26_v5  ;;  %v28_v8 = vld [vmem:[%s3450_s0 + $0x10] sm:$0xff]  ;;  %v29_v9 = vld [vmem:[%s3450_s0 + $0x18] sm:$0xff]  ;;  %v58_v10 = vld [vmem:[%s3450_s0 + $0x100] sm:$0xff] }
   0x4   :  { %2347 = vmatprep.subr.bf16.mxu0 %v2346_v3  ;;  %2418 = vmatprep.subr.bf16.mxu1 %v2346_v3  ;;  %v59_v11 = vld [vmem:[%s3450_s0 + $0x108] sm:$0xff]  ;;  %v60_v12 = vld [vmem:[%s3450_s0 + $0x110] sm:$0xff]  ;;  %v30_v13 = vld [vmem:[%s3450_s0 + $0x20] sm:$0xff] }
   0x5   :  { %2349 = vmatpush3.bf16.msra.mxu0 %v2346_v3  ;;  %2420 = vmatpush3.bf16.msra.mxu1 %v2346_v3  ;;  %v61_v14 = vld [vmem:[%s3450_s0 + $0x118] sm:$0xff]  ;;  %v31_v15 = vld [vmem:[%s3450_s0 + $0x28] sm:$0xff]  ;;  %v62_v16 = vld [vmem:[%s3450_s0 + $0x120] sm:$0xff] }
   0x6   :  { %2351 = vmatprep.subr.bf16.mxu0 %v2350_v6  ;;  %2419 = vmatprep.subr.bf16.mxu1 %v2350_v6  ;;  %v32_v17 = vld [vmem:[%s3450_s0 + $0x30] sm:$0xff]  ;;  %v63_v18 = vld [vmem:[%s3450_s0 + $0x128] sm:$0xff]  ;;  %v33_v19 = vld [vmem:[%s3450_s0 + $0x38] sm:$0xff] }
   0x7   :  { %2042 = vmatprep.mubr.msk.f32.mxu1 %vm101_vm0, %v58_v10  ;;  %v64_v20 = vld [vmem:[%s3450_s0 + $0x130] sm:$0xff]  ;;  %v34_v21 = vld [vmem:[%s3450_s0 + $0x40] sm:$0xff]  ;;  %v65_v22 = vld [vmem:[%s3450_s0 + $0x138] sm:$0xff] }
   0x8   :  { %v743_v23 = vld [vmem:[%s3451_s3] sm:$0xff]  ;;  %v744_v24 = vld [vmem:[%s3451_s3 + $0x8] sm:$0xff]  ;;  %v745_v25 = vld [vmem:[%s3451_s3 + $0x10] sm:$0xff] }
   0x9   :  { %2353 = vmatpush3.bf16.msra.mxu0 %v2350_v6  ;;  %2421 = vmatpush3.bf16.msra.mxu1 %v2350_v6  ;;  %v746_v26 = vld [vmem:[%s3451_s3 + $0x18] sm:$0xff]  ;;  %v35_v27 = vld [vmem:[%s3450_s0 + $0x48] sm:$0xff]  ;;  %v66_v28 = vld [vmem:[%s3450_s0 + $0x140] sm:$0xff]  ;;  %v2354_v29 = vpack.c.bf16 %v744_v24, %v743_v23 }
   0xa   :  { %v36_v30 = vld [vmem:[%s3450_s0 + $0x50] sm:$0xff]  ;;  %v2358_v31 = vpack.c.bf16 %v746_v26, %v745_v25  ;;  %v747_v32 = vld [vmem:[%s3451_s3 + $0x20] sm:$0xff]  ;;  %v748_v33 = vld [vmem:[%s3451_s3 + $0x28] sm:$0xff] }
   0xb   :  { %2355 = vmatprep.subr.bf16.mxu1 %v2354_v29  ;;  %v67_v34 = vld [vmem:[%s3450_s0 + $0x148] sm:$0xff]  ;;  %v37_v35 = vld [vmem:[%s3450_s0 + $0x58] sm:$0xff]  ;;  %v68_v36 = vld [vmem:[%s3450_s0 + $0x150] sm:$0xff]  ;;  %v2362_v38 = vpack.c.bf16 %v748_v33, %v747_v32 }
   0xc   :  { %1995 = vmatmul.mubr.msk.f32.vlgmr.msra.gmra.mrb[0].mxu0 %vm101_vm0, %v27_v7  ;;  %2043 = vmatmul.mubr.msk.f32.vlgmr.msra.gmra.mrb[0].mxu1 %vm101_vm0, %v59_v11  ;;  %v38_v37 = vld [vmem:[%s3450_s0 + $0x60] sm:$0xff]  ;;  %v749_v39 = vld [vmem:[%s3451_s3 + $0x30] sm:$0xff]  ;;  %v750_v40 = vld [vmem:[%s3451_s3 + $0x38] sm:$0xff] }
   0xd   :  { %1997 = vmatprep.mubr.msk.f32.mxu0 %vm101_vm0, %v28_v8  ;;  %2045 = vmatprep.mubr.msk.f32.mxu1 %vm101_vm0, %v60_v12  ;;  %v69_v41 = vld [vmem:[%s3450_s0 + $0x158] sm:$0xff]  ;;  %v39_v42 = vld [vmem:[%s3450_s0 + $0x68] sm:$0xff]  ;;  %v70_v43 = vld [vmem:[%s3450_s0 + $0x160] sm:$0xff]  ;;  %v2366_v45 = vpack.c.bf16 %v750_v40, %v749_v39 }
   0xe   :  { %2357 = vmatpush3.bf16.msra.mxu1 %v2354_v29  ;;  %v40_v44 = vld [vmem:[%s3450_s0 + $0x70] sm:$0xff]  ;;  %v751_v46 = vld [vmem:[%s3451_s3 + $0x40] sm:$0xff]  ;;  %v752_v47 = vld [vmem:[%s3451_s3 + $0x48] sm:$0xff] }
   0xf   :  { %2359 = vmatprep.subr.bf16.mxu1 %v2358_v31  ;;  %v71_v48 = vld [vmem:[%s3450_s0 + $0x168] sm:$0xff]  ;;  %v41_v49 = vld [vmem:[%s3450_s0 + $0x78] sm:$0xff]  ;;  %v72_v50 = vld [vmem:[%s3450_s0 + $0x170] sm:$0xff]  ;;  %v2370_v52 = vpack.c.bf16 %v752_v47, %v751_v46 }
  0x10   :  { %1998 = vmatmul.mubr.msk.f32.gmra.mrb[2].mxu0 %vm101_vm0, %v29_v9  ;;  %2046 = vmatmul.mubr.msk.f32.gmra.mrb[2].mxu1 %vm101_vm0, %v61_v14  ;;  %v42_v51 = vld [vmem:[%s3450_s0 + $0x80] sm:$0xff]  ;;  %v753_v53 = vld [vmem:[%s3451_s3 + $0x50] sm:$0xff]  ;;  %v754_v54 = vld [vmem:[%s3451_s3 + $0x58] sm:$0xff] }
  0x11   :  { %2000 = vmatprep.mubr.msk.f32.mxu0 %vm101_vm0, %v30_v13  ;;  %2048 = vmatprep.mubr.msk.f32.mxu1 %vm101_vm0, %v62_v16  ;;  %v73_v55 = vld [vmem:[%s3450_s0 + $0x178] sm:$0xff]  ;;  %v43_v56 = vld [vmem:[%s3450_s0 + $0x88] sm:$0xff]  ;;  %v74_v57 = vld [vmem:[%s3450_s0 + $0x180] sm:$0xff]  ;;  %v2374_v59 = vpack.c.bf16 %v754_v54, %v753_v53 }
  0x12   :  { %2361 = vmatpush3.bf16.msra.mxu1 %v2358_v31  ;;  %v44_v58 = vld [vmem:[%s3450_s0 + $0x90] sm:$0xff]  ;;  %v755_v60 = vld [vmem:[%s3451_s3 + $0x60] sm:$0xff]  ;;  %v756_v61 = vld [vmem:[%s3451_s3 + $0x68] sm:$0xff] }
  0x13   :  { %2363 = vmatprep.subr.bf16.mxu1 %v2362_v38  ;;  %v75_v62 = vld [vmem:[%s3450_s0 + $0x188] sm:$0xff]  ;;  %v45_v63 = vld [vmem:[%s3450_s0 + $0x98] sm:$0xff]  ;;  %v76_v0 = vld [vmem:[%s3450_s0 + $0x190] sm:$0xff]  ;;  %v2378_v2 = vpack.c.bf16 %v756_v61, %v755_v60 }
  0x14   :  { %2001 = vmatmul.mubr.msk.f32.gmra.mrb[4].mxu0 %vm101_vm0, %v31_v15  ;;  %2049 = vmatmul.mubr.msk.f32.gmra.mrb[4].mxu1 %vm101_vm0, %v63_v18  ;;  %v46_v1 = vld [vmem:[%s3450_s0 + $0xa0] sm:$0xff]  ;;  %v77_v3 = vld [vmem:[%s3450_s0 + $0x198] sm:$0xff]  ;;  %v47_v4 = vld [vmem:[%s3450_s0 + $0xa8] sm:$0xff] }
  0x15   :  { %2003 = vmatprep.mubr.msk.f32.mxu0 %vm101_vm0, %v32_v17  ;;  %2051 = vmatprep.mubr.msk.f32.mxu1 %vm101_vm0, %v64_v20  ;;  %v78_v5 = vld [vmem:[%s3450_s0 + $0x1a0] sm:$0xff]  ;;  %v48_v6 = vld [vmem:[%s3450_s0 + $0xb0] sm:$0xff]  ;;  %v79_v7 = vld [vmem:[%s3450_s0 + $0x1a8] sm:$0xff] }
  0x16   :  { %2365 = vmatpush3.bf16.msra.mxu1 %v2362_v38  ;;  %v49_v8 = vld [vmem:[%s3450_s0 + $0xb8] sm:$0xff]  ;;  %v80_v9 = vld [vmem:[%s3450_s0 + $0x1b0] sm:$0xff]  ;;  %v50_v10 = vld [vmem:[%s3450_s0 + $0xc0] sm:$0xff] }
  0x17   :  { %2367 = vmatprep.subr.bf16.mxu1 %v2366_v45  ;;  %v81_v11 = vld [vmem:[%s3450_s0 + $0x1b8] sm:$0xff]  ;;  %v51_v12 = vld [vmem:[%s3450_s0 + $0xc8] sm:$0xff]  ;;  %v82_v13 = vld [vmem:[%s3450_s0 + $0x1c0] sm:$0xff] }
  0x18   :  { %2004 = vmatmul.mubr.msk.f32.gmra.mrb[6].mxu0 %vm101_vm0, %v33_v19  ;;  %2052 = vmatmul.mubr.msk.f32.gmra.mrb[6].mxu1 %vm101_vm0, %v65_v22  ;;  %v52_v14 = vld [vmem:[%s3450_s0 + $0xd0] sm:$0xff]  ;;  %v83_v15 = vld [vmem:[%s3450_s0 + $0x1c8] sm:$0xff]  ;;  %v53_v16 = vld [vmem:[%s3450_s0 + $0xd8] sm:$0xff] }
  0x19   :  { %2006 = vmatprep.mubr.msk.f32.mxu0 %vm101_vm0, %v34_v21  ;;  %2054 = vmatprep.mubr.msk.f32.mxu1 %vm101_vm0, %v66_v28  ;;  %v84_v17 = vld [vmem:[%s3450_s0 + $0x1d0] sm:$0xff]  ;;  %v54_v18 = vld [vmem:[%s3450_s0 + $0xe0] sm:$0xff]  ;;  %v85_v19 = vld [vmem:[%s3450_s0 + $0x1d8] sm:$0xff] }
  0x1a   :  { %2369 = vmatpush3.bf16.msra.mxu1 %v2366_v45  ;;  %v55_v20 = vld [vmem:[%s3450_s0 + $0xe8] sm:$0xff]  ;;  %v86_v21 = vld [vmem:[%s3450_s0 + $0x1e0] sm:$0xff]  ;;  %v56_v22 = vld [vmem:[%s3450_s0 + $0xf0] sm:$0xff] }
  0x1b   :  { %2371 = vmatprep.subr.bf16.mxu1 %v2370_v52  ;;  %v87_v23 = vld [vmem:[%s3450_s0 + $0x1e8] sm:$0xff]  ;;  %v57_v24 = vld [vmem:[%s3450_s0 + $0xf8] sm:$0xff]  ;;  %v88_v25 = vld [vmem:[%s3450_s0 + $0x1f0] sm:$0xff] }
  0x1c   :  { %2007 = vmatmul.mubr.msk.f32.gmra.mrb[8].mxu0 %vm101_vm0, %v35_v27  ;;  %2055 = vmatmul.mubr.msk.f32.gmra.mrb[8].mxu1 %vm101_vm0, %v67_v34  ;;  %v89_v26 = vld [vmem:[%s3450_s0 + $0x1f8] sm:$0xff]  ;;  %v757_v27 = vld [vmem:[%s3451_s3 + $0x70] sm:$0xff] }
  0x1d   :  { %2009 = vmatprep.mubr.msk.f32.mxu0 %vm101_vm0, %v36_v30  ;;  %2057 = vmatprep.mubr.msk.f32.mxu1 %vm101_vm0, %v68_v36  ;;  %v758_v28 = vld [vmem:[%s3451_s3 + $0x78] sm:$0xff]  ;;  %v2909_v30 = vld [vmem:[%s3452_s2] ss:$0 sm:$0xff] }
  0x1e   :  { %2373 = vmatpush3.bf16.msra.mxu1 %v2370_v52  ;;  %v2382_v29 = vpack.c.bf16 %v758_v28, %v757_v27 }
  0x1f   :  { %2375 = vmatprep.subr.bf16.mxu1 %v2374_v59 }
  0x20   :  { %2010 = vmatmul.mubr.msk.f32.gmra.mrb[10].mxu0 %vm101_vm0, %v37_v35  ;;  %2058 = vmatmul.mubr.msk.f32.gmra.mrb[10].mxu1 %vm101_vm0, %v69_v41 }
  0x21   :  { %2012 = vmatprep.mubr.msk.f32.mxu0 %vm101_vm0, %v38_v37  ;;  %2060 = vmatprep.mubr.msk.f32.mxu1 %vm101_vm0, %v70_v43 }
  0x22   :  { %2377 = vmatpush3.bf16.msra.mxu1 %v2374_v59  ;;  %v1217_v59 = vld [vmem:[%s3453_s5 + $0x10] sm:$0xff] }
  0x23   :  { %2379 = vmatprep.subr.bf16.mxu1 %v2378_v2 }
  0x24   :  { %2013 = vmatmul.mubr.msk.f32.gmra.mrb[12].mxu0 %vm101_vm0, %v39_v42  ;;  %2061 = vmatmul.mubr.msk.f32.gmra.mrb[12].mxu1 %vm101_vm0, %v71_v48 }
  0x25   :  { %2015 = vmatprep.mubr.msk.f32.mxu0 %vm101_vm0, %v40_v44  ;;  %2063 = vmatprep.mubr.msk.f32.mxu1 %vm101_vm0, %v72_v50 }
  0x26   :  { %2381 = vmatpush3.bf16.msra.mxu1 %v2378_v2 }
  0x27   :  { %2383 = vmatprep.subr.bf16.mxu1 %v2382_v29 }
  0x28   :  { %2016 = vmatmul.mubr.msk.f32.gmra.mrb[14].mxu0 %vm101_vm0, %v41_v49  ;;  %2064 = vmatmul.mubr.msk.f32.gmra.mrb[14].mxu1 %vm101_vm0, %v73_v55 }
  0x29   :  { %2018 = vmatprep.mubr.msk.f32.mxu0 %vm101_vm0, %v42_v51  ;;  %2066 = vmatprep.mubr.msk.f32.mxu1 %vm101_vm0, %v74_v57  ;;  %v1215_v57 = vld [vmem:[%s3453_s5] sm:$0xff] }
  0x2a   :  { %2385 = vmatpush3.bf16.msra.mxu1 %v2382_v29  ;;  %v1223_v29 = vld [vmem:[%s3453_s5 + $0x40] sm:$0xff] }
  0x2c   :  { %2019 = vmatmul.mubr.msk.f32.gmra.mrb[16].mxu0 %vm101_vm0, %v43_v56  ;;  %2067 = vmatmul.mubr.msk.f32.gmra.mrb[16].mxu1 %vm101_vm0, %v75_v62 }
  0x2d   :  { %2021 = vmatprep.mubr.msk.f32.mxu0 %vm101_vm0, %v44_v58  ;;  %2069 = vmatprep.mubr.msk.f32.mxu1 %vm101_vm0, %v76_v0  ;;  %v1216_v58 = vld [vmem:[%s3453_s5 + $0x8] sm:$0xff] }
  0x2e   :  { %v2386_v62 = vpack.c.bf16 %v1216_v58, %v1215_v57 }
  0x30   :  { %2022 = vmatmul.mubr.msk.f32.gmra.mrb[18].mxu0 %vm101_vm0, %v45_v63  ;;  %2070 = vmatmul.mubr.msk.f32.gmra.mrb[18].mxu1 %vm101_vm0, %v77_v3  ;;  %v1218_v63 = vld [vmem:[%s3453_s5 + $0x18] sm:$0xff]  ;;  %v1219_v3 = vld [vmem:[%s3453_s5 + $0x20] sm:$0xff] }
  0x31   :  { %2024 = vmatprep.mubr.msk.f32.mxu0 %vm101_vm0, %v46_v1  ;;  %2072 = vmatprep.mubr.msk.f32.mxu1 %vm101_vm0, %v78_v5  ;;  %v2390_v2 = vpack.c.bf16 %v1218_v63, %v1217_v59  ;;  %v1228_v63 = vld [vmem:[%s3453_s5 + $0x68] sm:$0xff] }
  0x32   :  { %2387 = vmatprep.subr.bf16.mxu0 %v2386_v62 }
  0x33   :  { %2389 = vmatpush3.bf16.msra.mxu0 %v2386_v62  ;;  %v1227_v62 = vld [vmem:[%s3453_s5 + $0x60] sm:$0xff] }
  0x34   :  { %2025 = vmatmul.mubr.msk.f32.gmra.mrb[20].mxu0 %vm101_vm0, %v47_v4  ;;  %2073 = vmatmul.mubr.msk.f32.gmra.mrb[20].mxu1 %vm101_vm0, %v79_v7  ;;  %v1220_v4 = vld [vmem:[%s3453_s5 + $0x28] sm:$0xff] }
  0x35   :  { %2027 = vmatprep.mubr.msk.f32.mxu0 %vm101_vm0, %v48_v6  ;;  %2075 = vmatprep.mubr.msk.f32.mxu1 %vm101_vm0, %v80_v9 }
  0x36   :  { %2391 = vmatprep.subr.bf16.mxu0 %v2390_v2 }
  0x37   :  { %2393 = vmatpush3.bf16.msra.mxu0 %v2390_v2 }
  0x38   :  { %2028 = vmatmul.mubr.msk.f32.gmra.mrb[22].mxu0 %vm101_vm0, %v49_v8  ;;  %2076 = vmatmul.mubr.msk.f32.gmra.mrb[22].mxu1 %vm101_vm0, %v81_v11 }
  0x39   :  { %2030 = vmatprep.mubr.msk.f32.mxu0 %vm101_vm0, %v50_v10  ;;  %2078 = vmatprep.mubr.msk.f32.mxu1 %vm101_vm0, %v82_v13  ;;  %v2394_v13 = vpack.c.bf16 %v1220_v4, %v1219_v3 }
  0x3b   :  { %2395 = vmatprep.subr.bf16.mxu0 %v2394_v13 }
  0x3c   :  { %2031 = vmatmul.mubr.msk.f32.gmra.mrb[24].mxu0 %vm101_vm0, %v51_v12  ;;  %2079 = vmatmul.mubr.msk.f32.gmra.mrb[24].mxu1 %vm101_vm0, %v83_v15 }
  0x3d   :  { %2033 = vmatprep.mubr.msk.f32.mxu0 %vm101_vm0, %v52_v14  ;;  %2081 = vmatprep.mubr.msk.f32.mxu1 %vm101_vm0, %v84_v17  ;;  %v1222_v17 = vld [vmem:[%s3453_s5 + $0x38] sm:$0xff] }
  0x3e   :  { %2397 = vmatpush3.bf16.msra.mxu0 %v2394_v13  ;;  %v1229_v13 = vld [vmem:[%s3453_s5 + $0x70] sm:$0xff] }
  0x40   :  { %2034 = vmatmul.mubr.msk.f32.gmra.mrb[26].mxu0 %vm101_vm0, %v53_v16  ;;  %2082 = vmatmul.mubr.msk.f32.gmra.mrb[26].mxu1 %vm101_vm0, %v85_v19  ;;  %v1221_v16 = vld [vmem:[%s3453_s5 + $0x30] sm:$0xff] }
  0x41   :  { %2036 = vmatprep.mubr.msk.f32.mxu0 %vm101_vm0, %v54_v18  ;;  %2084 = vmatprep.mubr.msk.f32.mxu1 %vm101_vm0, %v86_v21 }
  0x44   :  { %2037 = vmatmul.mubr.msk.f32.gmra.mrb[28].mxu0 %vm101_vm0, %v55_v20  ;;  %2085 = vmatmul.mubr.msk.f32.gmra.mrb[28].mxu1 %vm101_vm0, %v87_v23 }
  0x45   :  { %2039 = vmatprep.mubr.msk.f32.mxu0 %vm101_vm0, %v56_v22  ;;  %2087 = vmatprep.mubr.msk.f32.mxu1 %vm101_vm0, %v88_v25 }
  0x48   :  { %2040 = vmatmul.mubr.msk.f32.gmra.mrb[30].mxu0 %vm101_vm0, %v57_v24  ;;  %2088 = vmatmul.mubr.msk.f32.gmra.mrb[30].mxu1 %vm101_vm0, %v89_v26  ;;  %v2398_v26 = vpack.c.bf16 %v1222_v17, %v1221_v16 }
  0x4a   :  { %2399 = vmatprep.subr.bf16.mxu0 %v2398_v26 }
  0x4b   :  { %2401 = vmatpush3.bf16.msra.mxu0 %v2398_v26 }
  0xdf   :  { %v1996_v31 = vpop.f32.mrb[0].mxu0  ;;  %v2044_v35 = vpop.f32.mrb[0].mxu1 }
  0xe0   :  { %v366_v32 = vadd.f32 %v1996_v31, %v2909_v30  ;;  %v360_v33 = vpop.f32.mrb[1].mxu0  ;;  %v2914_v37 = vadd.f32 %v2044_v35, %v2909_v30  ;;  %v2916_v38 = vpop.f32.mrb[1].mxu1  ;;  %v1224_v31 = vld [vmem:[%s3453_s5 + $0x48] sm:$0xff] }
  0xe1   :  { %v361_v34 = vadd.f32 %v2909_v30, %v360_v33 }
  0xe3   :  { %2422 = vtanh.f32 %v361_v34  ;;  %v1999_v36 = vpop.f32.mrb[2].mxu0  ;;  %v2047_v42 = vpop.f32.mrb[2].mxu1 }
  0xe4   :  { %2424 = vtanh.f32 %v366_v32  ;;  %v376_v39 = vadd.f32 %v1999_v36, %v2909_v30  ;;  %v370_v40 = vpop.f32.mrb[3].mxu0  ;;  %v2921_v44 = vadd.f32 %v2047_v42, %v2909_v30  ;;  %v530_v45 = vpop.f32.mrb[3].mxu1  ;;  %v2402_v42 = vpack.c.bf16 %v1224_v31, %v1223_v29 }
  0xe5   :  { %v371_v41 = vadd.f32 %v2909_v30, %v370_v40  ;;  %v2925_v48 = vadd.f32 %v2909_v30, %v530_v45 }
  0xe6   :  { %2403 = vmatprep.subr.bf16.mxu0 %v2402_v42 }
  0xe7   :  { %2426 = vtanh.f32 %v371_v41  ;;  %v2002_v43 = vpop.f32.mrb[4].mxu0  ;;  %v2050_v50 = vpop.f32.mrb[4].mxu1  ;;  %2405 = vmatpush3.bf16.msra.mxu0 %v2402_v42 }
  0xe8   :  { %2428 = vtanh.f32 %v376_v39  ;;  %v386_v46 = vadd.f32 %v2002_v43, %v2909_v30  ;;  %v380_v47 = vpop.f32.mrb[5].mxu0  ;;  %v2929_v52 = vadd.f32 %v2050_v50, %v2909_v30  ;;  %v540_v53 = vpop.f32.mrb[5].mxu1 }
  0xe9   :  { %v381_v49 = vadd.f32 %v2909_v30, %v380_v47  ;;  %v2933_v56 = vadd.f32 %v2909_v30, %v540_v53  ;;  %v1226_v47 = vld [vmem:[%s3453_s5 + $0x58] sm:$0xff] }
  0xeb   :  { %2430 = vtanh.f32 %v381_v49  ;;  %v2005_v51 = vpop.f32.mrb[6].mxu0  ;;  %v2053_v1 = vpop.f32.mrb[6].mxu1 }
  0xec   :  { %2432 = vtanh.f32 %v386_v46  ;;  %v396_v54 = vadd.f32 %v2005_v51, %v2909_v30  ;;  %v390_v55 = vpop.f32.mrb[7].mxu0  ;;  %v2955_v6 = vadd.f32 %v2053_v1, %v2909_v30  ;;  %v550_v7 = vpop.f32.mrb[7].mxu1  ;;  %v1225_v46 = vld [vmem:[%s3453_s5 + $0x50] sm:$0xff] }
  0xed   :  { %v2423_v60 = vpop.eup %2422  ;;  %v391_v61 = vadd.f32 %v2909_v30, %v390_v55  ;;  %v2959_v10 = vadd.f32 %v2909_v30, %v550_v7  ;;  %v2406_v59 = vpack.c.bf16 %v1226_v47, %v1225_v46 }
  0xee   :  { %v2425_v0 = vpop.eup %2424  ;;  %2122 = vmatprep.mubr.f32.mxu1 %v2423_v60 }
  0xef   :  { %2434 = vtanh.f32 %v391_v61  ;;  %v2008_v5 = vpop.f32.mrb[8].mxu0  ;;  %2123 = vmatmul.mubr.f32.vlgmr.msra.gmra.mrb[32].mxu1 %v2425_v0  ;;  %v2056_v15 = vpop.f32.mrb[8].mxu1  ;;  %2407 = vmatprep.subr.bf16.mxu0 %v2406_v59 }
  0xf0   :  { %2436 = vtanh.f32 %v396_v54  ;;  %v406_v8 = vadd.f32 %v2008_v5, %v2909_v30  ;;  %v400_v9 = vpop.f32.mrb[9].mxu0  ;;  %v2969_v19 = vadd.f32 %v2056_v15, %v2909_v30  ;;  %v560_v20 = vpop.f32.mrb[9].mxu1  ;;  %2409 = vmatpush3.bf16.msra.mxu0 %v2406_v59 }
  0xf1   :  { %v2427_v11 = vpop.eup %2426  ;;  %v401_v12 = vadd.f32 %v2909_v30, %v400_v9  ;;  %v2973_v23 = vadd.f32 %v2909_v30, %v560_v20  ;;  %v2410_v9 = vpack.c.bf16 %v1228_v63, %v1227_v62 }
  0xf2   :  { %v2429_v14 = vpop.eup %2428  ;;  %2125 = vmatprep.mubr.f32.mxu1 %v2427_v11 }
  0xf3   :  { %2438 = vtanh.f32 %v401_v12  ;;  %v2011_v18 = vpop.f32.mrb[10].mxu0  ;;  %2126 = vmatmul.mubr.f32.gmra.mrb[34].mxu1 %v2429_v14  ;;  %v2059_v28 = vpop.f32.mrb[10].mxu1  ;;  %v1230_v14 = vld [vmem:[%s3453_s5 + $0x78] sm:$0xff]  ;;  %2411 = vmatprep.subr.bf16.mxu0 %v2410_v9 }
  0xf4   :  { %2440 = vtanh.f32 %v406_v8  ;;  %v416_v21 = vadd.f32 %v2011_v18, %v2909_v30  ;;  %v410_v22 = vpop.f32.mrb[11].mxu0  ;;  %v2983_v33 = vadd.f32 %v2059_v28, %v2909_v30  ;;  %v570_v34 = vpop.f32.mrb[11].mxu1  ;;  %2413 = vmatpush3.bf16.msra.mxu0 %v2410_v9 }
  0xf5   :  { %v2431_v24 = vpop.eup %2430  ;;  %v411_v25 = vadd.f32 %v2909_v30, %v410_v22  ;;  %v2987_v39 = vadd.f32 %v2909_v30, %v570_v34 }
  0xf6   :  { %v2433_v27 = vpop.eup %2432  ;;  %2128 = vmatprep.mubr.f32.mxu1 %v2431_v24 }
  0xf7   :  { %2442 = vtanh.f32 %v411_v25  ;;  %v2014_v32 = vpop.f32.mrb[12].mxu0  ;;  %2129 = vmatmul.mubr.f32.gmra.mrb[36].mxu1 %v2433_v27  ;;  %v2062_v45 = vpop.f32.mrb[12].mxu1  ;;  %v2414_v25 = vpack.c.bf16 %v1230_v14, %v1229_v13 }
  0xf8   :  { %2444 = vtanh.f32 %v416_v21  ;;  %v426_v35 = vadd.f32 %v2014_v32, %v2909_v30  ;;  %v420_v36 = vpop.f32.mrb[13].mxu0  ;;  %v2997_v50 = vadd.f32 %v2062_v45, %v2909_v30  ;;  %v580_v51 = vpop.f32.mrb[13].mxu1 }
  0xf9   :  { %v2435_v40 = vpop.eup %2434  ;;  %v421_v41 = vadd.f32 %v2909_v30, %v420_v36  ;;  %v3001_v55 = vadd.f32 %v2909_v30, %v580_v51  ;;  %2415 = vmatprep.subr.bf16.mxu0 %v2414_v25 }
  0xfa   :  { %v2437_v43 = vpop.eup %2436  ;;  %2131 = vmatprep.mubr.f32.mxu1 %v2435_v40  ;;  %2417 = vmatpush3.bf16.msra.mxu0 %v2414_v25 }
  0xfb   :  { %2446 = vtanh.f32 %v421_v41  ;;  %v2017_v49 = vpop.f32.mrb[14].mxu0  ;;  %2132 = vmatmul.mubr.f32.gmra.mrb[38].mxu1 %v2437_v43  ;;  %v2065_v61 = vpop.f32.mrb[14].mxu1 }
  0xfc   :  { %2448 = vtanh.f32 %v426_v35  ;;  %v436_v53 = vadd.f32 %v2017_v49, %v2909_v30  ;;  %v430_v54 = vpop.f32.mrb[15].mxu0  ;;  %v3011_v1 = vadd.f32 %v2065_v61, %v2909_v30  ;;  %v590_v2 = vpop.f32.mrb[15].mxu1 }
  0xfd   :  { %v2439_v57 = vpop.eup %2438  ;;  %v431_v58 = vadd.f32 %v2909_v30, %v430_v54  ;;  %v3015_v5 = vadd.f32 %v2909_v30, %v590_v2 }
  0xfe   :  { %v2441_v60 = vpop.eup %2440  ;;  %2134 = vmatprep.mubr.f32.mxu1 %v2439_v57 }
  0xff   :  { %2450 = vtanh.f32 %v431_v58  ;;  %v2020_v0 = vpop.f32.mrb[16].mxu0  ;;  %2135 = vmatmul.mubr.f32.gmra.mrb[40].mxu1 %v2441_v60  ;;  %v2068_v12 = vpop.f32.mrb[16].mxu1 }
 0x100   :  { %2452 = vtanh.f32 %v436_v53  ;;  %v446_v3 = vadd.f32 %v2020_v0, %v2909_v30  ;;  %v440_v4 = vpop.f32.mrb[17].mxu0  ;;  %v3025_v16 = vadd.f32 %v2068_v12, %v2909_v30  ;;  %v600_v17 = vpop.f32.mrb[17].mxu1 }
 0x101   :  { %v2443_v7 = vpop.eup %2442  ;;  %v441_v8 = vadd.f32 %v2909_v30, %v440_v4  ;;  %v3029_v21 = vadd.f32 %v2909_v30, %v600_v17 }
 0x102   :  { %v2445_v11 = vpop.eup %2444  ;;  %2137 = vmatprep.mubr.f32.mxu1 %v2443_v7 }
 0x103   :  { %2454 = vtanh.f32 %v441_v8  ;;  %v2023_v15 = vpop.f32.mrb[18].mxu0  ;;  %2138 = vmatmul.mubr.f32.gmra.mrb[42].mxu1 %v2445_v11  ;;  %v2071_v27 = vpop.f32.mrb[18].mxu1 }
 0x104   :  { %2456 = vtanh.f32 %v446_v3  ;;  %v456_v18 = vadd.f32 %v2023_v15, %v2909_v30  ;;  %v450_v20 = vpop.f32.mrb[19].mxu0  ;;  %v3033_v29 = vadd.f32 %v2071_v27, %v2909_v30  ;;  %v610_v31 = vpop.f32.mrb[19].mxu1 }
 0x105   :  { %v2447_v22 = vpop.eup %2446  ;;  %v451_v24 = vadd.f32 %v2909_v30, %v450_v20  ;;  %v3037_v35 = vadd.f32 %v2909_v30, %v610_v31 }
 0x106   :  { %v2449_v26 = vpop.eup %2448  ;;  %2140 = vmatprep.mubr.f32.mxu1 %v2447_v22 }
 0x107   :  { %2458 = vtanh.f32 %v451_v24  ;;  %v2026_v28 = vpop.f32.mrb[20].mxu0  ;;  %2141 = vmatmul.mubr.f32.gmra.mrb[44].mxu1 %v2449_v26  ;;  %v2074_v42 = vpop.f32.mrb[20].mxu1 }
 0x108   :  { %2460 = vtanh.f32 %v456_v18  ;;  %v466_v32 = vadd.f32 %v2026_v28, %v2909_v30  ;;  %v460_v34 = vpop.f32.mrb[21].mxu0  ;;  %v3041_v45 = vadd.f32 %v2074_v42, %v2909_v30  ;;  %v620_v46 = vpop.f32.mrb[21].mxu1 }
 0x109   :  { %v2451_v36 = vpop.eup %2450  ;;  %v461_v40 = vadd.f32 %v2909_v30, %v460_v34  ;;  %v3045_v51 = vadd.f32 %v2909_v30, %v620_v46 }
 0x10a   :  { %v2453_v41 = vpop.eup %2452  ;;  %2143 = vmatprep.mubr.f32.mxu1 %v2451_v36  ;;  %v521_v36 = vadd.f32 %v2909_v30, %v2916_v38 }
 0x10b   :  { %2462 = vtanh.f32 %v461_v40  ;;  %v2029_v43 = vpop.f32.mrb[22].mxu0  ;;  %2144 = vmatmul.mubr.f32.gmra.mrb[46].mxu1 %v2453_v41  ;;  %v2077_v58 = vpop.f32.mrb[22].mxu1 }
 0x10c   :  { %2464 = vtanh.f32 %v466_v32  ;;  %v476_v47 = vadd.f32 %v2029_v43, %v2909_v30  ;;  %v470_v49 = vpop.f32.mrb[23].mxu0  ;;  %v3049_v60 = vadd.f32 %v2077_v58, %v2909_v30  ;;  %v630_v61 = vpop.f32.mrb[23].mxu1 }
 0x10d   :  { %v2455_v53 = vpop.eup %2454  ;;  %v471_v54 = vadd.f32 %v2909_v30, %v470_v49  ;;  %v3053_v0 = vadd.f32 %v2909_v30, %v630_v61 }
 0x10e   :  { %v2457_v57 = vpop.eup %2456  ;;  %2146 = vmatprep.mubr.f32.mxu1 %v2455_v53 }
 0x10f   :  { %2466 = vtanh.f32 %v471_v54  ;;  %v2032_v59 = vpop.f32.mrb[24].mxu0  ;;  %2147 = vmatmul.mubr.f32.gmra.mrb[48].mxu1 %v2457_v57  ;;  %v2080_v7 = vpop.f32.mrb[24].mxu1 }
 0x110   :  { %2468 = vtanh.f32 %v476_v47  ;;  %v486_v62 = vadd.f32 %v2032_v59, %v2909_v30  ;;  %v480_v63 = vpop.f32.mrb[25].mxu0  ;;  %v3057_v9 = vadd.f32 %v2080_v7, %v2909_v30  ;;  %v640_v11 = vpop.f32.mrb[25].mxu1 }
 0x111   :  { %v2459_v2 = vpop.eup %2458  ;;  %v481_v3 = vadd.f32 %v2909_v30, %v480_v63  ;;  %v3061_v14 = vadd.f32 %v2909_v30, %v640_v11 }
 0x112   :  { %v2461_v4 = vpop.eup %2460  ;;  %2149 = vmatprep.mubr.f32.mxu1 %v2459_v2 }
 0x113   :  { %2470 = vtanh.f32 %v481_v3  ;;  %v2035_v8 = vpop.f32.mrb[26].mxu0  ;;  %2150 = vmatmul.mubr.f32.gmra.mrb[50].mxu1 %v2461_v4  ;;  %v2083_v20 = vpop.f32.mrb[26].mxu1 }
 0x114   :  { %2472 = vtanh.f32 %v486_v62  ;;  %v496_v12 = vadd.f32 %v2035_v8, %v2909_v30  ;;  %v490_v13 = vpop.f32.mrb[27].mxu0  ;;  %v3065_v24 = vadd.f32 %v2083_v20, %v2909_v30  ;;  %v650_v25 = vpop.f32.mrb[27].mxu1 }
 0x115   :  { %v2463_v15 = vpop.eup %2462  ;;  %v491_v17 = vadd.f32 %v2909_v30, %v490_v13  ;;  %v3069_v28 = vadd.f32 %v2909_v30, %v650_v25 }
 0x116   :  { %v2465_v18 = vpop.eup %2464  ;;  %2152 = vmatprep.mubr.f32.mxu1 %v2463_v15 }
 0x117   :  { %2474 = vtanh.f32 %v491_v17  ;;  %v2038_v22 = vpop.f32.mrb[28].mxu0  ;;  %2153 = vmatmul.mubr.f32.gmra.mrb[52].mxu1 %v2465_v18  ;;  %v2086_v40 = vpop.f32.mrb[28].mxu1  ;;  %v3122_v18 = vld [vmem:[%s3454_s4] ss:$0 sm:$0xff] }
 0x118   :  { %2476 = vtanh.f32 %v496_v12  ;;  %v506_v26 = vadd.f32 %v2038_v22, %v2909_v30  ;;  %v500_v27 = vpop.f32.mrb[29].mxu0  ;;  %v3075_v42 = vadd.f32 %v2086_v40, %v2909_v30  ;;  %v660_v43 = vpop.f32.mrb[29].mxu1 }
 0x119   :  { %v2467_v31 = vpop.eup %2466  ;;  %v501_v32 = vadd.f32 %v2909_v30, %v500_v27  ;;  %v3079_v49 = vadd.f32 %v2909_v30, %v660_v43 }
 0x11a   :  { %v2469_v34 = vpop.eup %2468  ;;  %2155 = vmatprep.mubr.f32.mxu1 %v2467_v31 }
 0x11b   :  { %2478 = vtanh.f32 %v501_v32  ;;  %v2041_v41 = vpop.f32.mrb[30].mxu0  ;;  %2156 = vmatmul.mubr.f32.gmra.mrb[54].mxu1 %v2469_v34  ;;  %v2089_v38 = vpop.f32.mrb[30].mxu1 }
 0x11c   :  { %2480 = vtanh.f32 %v506_v26  ;;  %v516_v46 = vadd.f32 %v2041_v41, %v2909_v30  ;;  %v510_v47 = vpop.f32.mrb[31].mxu0  ;;  %v3083_v58 = vadd.f32 %v2089_v38, %v2909_v30  ;;  %v670_v59 = vpop.f32.mrb[31].mxu1 }
 0x11d   :  { %v2471_v53 = vpop.eup %2470  ;;  %v511_v54 = vadd.f32 %v2909_v30, %v510_v47  ;;  %2482 = vtanh.f32 %v521_v36  ;;  %v3086_v61 = vadd.f32 %v2909_v30, %v670_v59 }
 0x11e   :  { %v2473_v57 = vpop.eup %2472  ;;  %2158 = vmatprep.mubr.f32.mxu1 %v2471_v53 }
 0x11f   :  { %2484 = vtanh.f32 %v511_v54  ;;  %2159 = vmatmul.mubr.f32.gmra.mrb[56].mxu1 %v2473_v57 }
 0x120   :  { %2486 = vtanh.f32 %v516_v46 }
 0x121   :  { %v2475_v62 = vpop.eup %2474  ;;  %2488 = vtanh.f32 %v2925_v48 }
 0x122   :  { %v2477_v63 = vpop.eup %2476  ;;  %2161 = vmatprep.mubr.f32.mxu1 %v2475_v62  ;;  %2490 = vtanh.f32 %v2914_v37 }
 0x123   :  { %2162 = vmatmul.mubr.f32.gmra.mrb[58].mxu1 %v2477_v63  ;;  %2492 = vtanh.f32 %v2933_v56 }
 0x124   :  { %2494 = vtanh.f32 %v2921_v44 }
 0x125   :  { %v2479_v2 = vpop.eup %2478  ;;  %2496 = vtanh.f32 %v2959_v10 }
 0x126   :  { %v2481_v3 = vpop.eup %2480  ;;  %2164 = vmatprep.mubr.f32.mxu1 %v2479_v2  ;;  %2498 = vtanh.f32 %v2929_v52 }
 0x127   :  { %2165 = vmatmul.mubr.f32.gmra.mrb[60].mxu1 %v2481_v3  ;;  %v2483_v4 = vpop.eup %2482  ;;  %2500 = vtanh.f32 %v2973_v23 }
 0x128   :  { %2502 = vtanh.f32 %v2955_v6 }
 0x129   :  { %v2485_v7 = vpop.eup %2484  ;;  %2504 = vtanh.f32 %v2987_v39 }
 0x12a   :  { %v2487_v30 = vpop.eup %2486  ;;  %2167 = vmatprep.mubr.f32.mxu1 %v2485_v7  ;;  %2506 = vtanh.f32 %v2969_v19 }
 0x12b   :  { %2168 = vmatmul.mubr.f32.gmra.mrb[62].mxu1 %v2487_v30  ;;  %v2489_v48 = vpop.eup %2488  ;;  %2508 = vtanh.f32 %v3001_v55 }
 0x12c   :  { %2170 = vmatprep.mubr.f32.mxu1 %v2483_v4  ;;  %v2491_v37 = vpop.eup %2490  ;;  %2510 = vtanh.f32 %v2983_v33 }
 0x12d   :  { %v2493_v56 = vpop.eup %2492  ;;  %2512 = vtanh.f32 %v3015_v5 }
 0x12e   :  { %v2495_v8 = vpop.eup %2494  ;;  %2514 = vtanh.f32 %v2997_v50 }
 0x12f   :  { %2171 = vmatmul.mubr.f32.gmra.mrb[64].mxu1 %v2491_v37  ;;  %v2497_v44 = vpop.eup %2496  ;;  %2516 = vtanh.f32 %v3029_v21 }
 0x130   :  { %2173 = vmatprep.mubr.f32.mxu1 %v2489_v48  ;;  %v2499_v10 = vpop.eup %2498  ;;  %2518 = vtanh.f32 %v3011_v1 }
 0x131   :  { %v2501_v52 = vpop.eup %2500  ;;  %2520 = vtanh.f32 %v3037_v35 }
 0x132   :  { %v2503_v23 = vpop.eup %2502  ;;  %2522 = vtanh.f32 %v3025_v16 }
 0x133   :  { %2174 = vmatmul.mubr.f32.gmra.mrb[66].mxu1 %v2495_v8  ;;  %v2505_v6 = vpop.eup %2504  ;;  %2524 = vtanh.f32 %v3045_v51 }
 0x134   :  { %2176 = vmatprep.mubr.f32.mxu1 %v2493_v56  ;;  %v2507_v39 = vpop.eup %2506  ;;  %2526 = vtanh.f32 %v3033_v29 }
 0x135   :  { %v2509_v19 = vpop.eup %2508  ;;  %2528 = vtanh.f32 %v3053_v0 }
 0x136   :  { %v2511_v55 = vpop.eup %2510  ;;  %2530 = vtanh.f32 %v3041_v45 }
 0x137   :  { %2177 = vmatmul.mubr.f32.gmra.mrb[68].mxu1 %v2499_v10  ;;  %v2513_v33 = vpop.eup %2512  ;;  %2532 = vtanh.f32 %v3061_v14 }
 0x138   :  { %2179 = vmatprep.mubr.f32.mxu1 %v2497_v44  ;;  %v2515_v5 = vpop.eup %2514  ;;  %2534 = vtanh.f32 %v3049_v60 }
 0x139   :  { %v2517_v50 = vpop.eup %2516  ;;  %2536 = vtanh.f32 %v3069_v28 }
 0x13a   :  { %v2519_v21 = vpop.eup %2518  ;;  %2538 = vtanh.f32 %v3057_v9 }
 0x13b   :  { %2180 = vmatmul.mubr.f32.gmra.mrb[70].mxu1 %v2503_v23  ;;  %v2521_v1 = vpop.eup %2520  ;;  %2540 = vtanh.f32 %v3079_v49 }
 0x13c   :  { %2182 = vmatprep.mubr.f32.mxu1 %v2501_v52  ;;  %v2523_v35 = vpop.eup %2522  ;;  %2542 = vtanh.f32 %v3065_v24 }
 0x13d   :  { %v2525_v16 = vpop.eup %2524  ;;  %2544 = vtanh.f32 %v3086_v61 }
 0x13e   :  { %v2527_v51 = vpop.eup %2526  ;;  %2546 = vtanh.f32 %v3075_v42 }
 0x13f   :  { %2183 = vmatmul.mubr.f32.gmra.mrb[72].mxu1 %v2507_v39  ;;  %v2529_v29 = vpop.eup %2528  ;;  %2548 = vtanh.f32 %v3083_v58 }
 0x140   :  { %2185 = vmatprep.mubr.f32.mxu1 %v2505_v6  ;;  %v2531_v0 = vpop.eup %2530 }
 0x141   :  { %v2533_v45 = vpop.eup %2532 }
 0x142   :  { %v2535_v11 = vpop.eup %2534 }
 0x143   :  { %2186 = vmatmul.mubr.f32.gmra.mrb[74].mxu1 %v2511_v55  ;;  %v2537_v60 = vpop.eup %2536 }
 0x144   :  { %2188 = vmatprep.mubr.f32.mxu1 %v2509_v19  ;;  %v2539_v12 = vpop.eup %2538 }
 0x145   :  { %v2541_v9 = vpop.eup %2540 }
 0x146   :  { %v2543_v13 = vpop.eup %2542 }
 0x147   :  { %2189 = vmatmul.mubr.f32.gmra.mrb[76].mxu1 %v2515_v5  ;;  %v2545_v14 = vpop.eup %2544 }
 0x148   :  { %2191 = vmatprep.mubr.f32.mxu1 %v2513_v33  ;;  %v2547_v15 = vpop.eup %2546 }
 0x149   :  { %v2549_v17 = vpop.eup %2548 }
 0x14b   :  { %2192 = vmatmul.mubr.f32.gmra.mrb[78].mxu1 %v2519_v21 }
 0x14c   :  { %2194 = vmatprep.mubr.f32.mxu1 %v2517_v50 }
 0x14f   :  { %2195 = vmatmul.mubr.f32.gmra.mrb[80].mxu1 %v2523_v35 }
 0x150   :  { %2197 = vmatprep.mubr.f32.mxu1 %v2521_v1 }
 0x153   :  { %2198 = vmatmul.mubr.f32.gmra.mrb[82].mxu1 %v2527_v51 }
 0x154   :  { %2200 = vmatprep.mubr.f32.mxu1 %v2525_v16 }
 0x157   :  { %2201 = vmatmul.mubr.f32.gmra.mrb[84].mxu1 %v2531_v0 }
 0x158   :  { %2203 = vmatprep.mubr.f32.mxu1 %v2529_v29 }
 0x15b   :  { %2204 = vmatmul.mubr.f32.gmra.mrb[86].mxu1 %v2535_v11 }
 0x15c   :  { %2206 = vmatprep.mubr.f32.mxu1 %v2533_v45 }
 0x15f   :  { %2207 = vmatmul.mubr.f32.gmra.mrb[88].mxu1 %v2539_v12 }
 0x160   :  { %2209 = vmatprep.mubr.f32.mxu1 %v2537_v60 }
 0x163   :  { %2210 = vmatmul.mubr.f32.gmra.mrb[90].mxu1 %v2543_v13 }
 0x164   :  { %2212 = vmatprep.mubr.f32.mxu1 %v2541_v9 }
 0x167   :  { %2213 = vmatmul.mubr.f32.gmra.mrb[92].mxu1 %v2547_v15 }
 0x168   :  { %2215 = vmatprep.mubr.f32.mxu1 %v2545_v14 }
 0x16b   :  { %2216 = vmatmul.mubr.f32.gmra.mrb[94].mxu1 %v2549_v17 }
 0x1c2   :  { %v2124_v20 = vpop.f32.mrb[32].mxu1 }
 0x1c3   :  { %v838_v22 = vadd.f32 %v2124_v20, %v3122_v18  ;;  %v832_v24 = vpop.f32.mrb[33].mxu1 }
 0x1c4   :  { %v833_v25 = vadd.f32 %v3122_v18, %v832_v24 }
 0x1c5   :  { %v1152_v28 = vmax.f32 %v838_v22, 0.0 }
 0x1c6   :  { %v1151_v26 = vmax.f32 %v833_v25, 0.0  ;;  %v2127_v27 = vpop.f32.mrb[34].mxu1 }
 0x1c7   :  { %v848_v31 = vadd.f32 %v2127_v27, %v3122_v18  ;;  %v842_v32 = vpop.f32.mrb[35].mxu1 }
 0x1c8   :  { %v843_v34 = vadd.f32 %v3122_v18, %v842_v32  ;;  %2250 = vmatprep.mubr.f32.mxu0 %v1151_v26 }
 0x1c9   :  { %2251 = vmatmul.mubr.f32.vlgmr.msra.gmra.mrb[32].mxu0 %v1152_v28  ;;  %v1154_v41 = vmax.f32 %v848_v31, 0.0 }
 0x1ca   :  { %v1153_v36 = vmax.f32 %v843_v34, 0.0  ;;  %v2130_v40 = vpop.f32.mrb[36].mxu1 }
 0x1cb   :  { %v858_v42 = vadd.f32 %v2130_v40, %v3122_v18  ;;  %v852_v43 = vpop.f32.mrb[37].mxu1 }
 0x1cc   :  { %v853_v46 = vadd.f32 %v3122_v18, %v852_v43  ;;  %2253 = vmatprep.mubr.f32.mxu0 %v1153_v36 }
 0x1cd   :  { %2254 = vmatmul.mubr.f32.gmra.mrb[34].mxu0 %v1154_v41  ;;  %v1156_v53 = vmax.f32 %v858_v42, 0.0 }
 0x1ce   :  { %v1155_v47 = vmax.f32 %v853_v46, 0.0  ;;  %v2133_v49 = vpop.f32.mrb[38].mxu1 }
 0x1cf   :  { %v868_v54 = vadd.f32 %v2133_v49, %v3122_v18  ;;  %v862_v57 = vpop.f32.mrb[39].mxu1 }
 0x1d0   :  { %v863_v38 = vadd.f32 %v3122_v18, %v862_v57  ;;  %2256 = vmatprep.mubr.f32.mxu0 %v1155_v47 }
 0x1d1   :  { %2257 = vmatmul.mubr.f32.gmra.mrb[36].mxu0 %v1156_v53  ;;  %v1158_v61 = vmax.f32 %v868_v54, 0.0 }
 0x1d2   :  { %v1157_v58 = vmax.f32 %v863_v38, 0.0  ;;  %v2136_v59 = vpop.f32.mrb[40].mxu1 }
 0x1d3   :  { %v878_v62 = vadd.f32 %v2136_v59, %v3122_v18  ;;  %v872_v63 = vpop.f32.mrb[41].mxu1 }
 0x1d4   :  { %v873_v2 = vadd.f32 %v3122_v18, %v872_v63  ;;  %2259 = vmatprep.mubr.f32.mxu0 %v1157_v58 }
 0x1d5   :  { %2260 = vmatmul.mubr.f32.gmra.mrb[38].mxu0 %v1158_v61  ;;  %v1160_v7 = vmax.f32 %v878_v62, 0.0 }
 0x1d6   :  { %v1159_v3 = vmax.f32 %v873_v2, 0.0  ;;  %v2139_v4 = vpop.f32.mrb[42].mxu1 }
 0x1d7   :  { %v888_v30 = vadd.f32 %v2139_v4, %v3122_v18  ;;  %v882_v48 = vpop.f32.mrb[43].mxu1 }
 0x1d8   :  { %v883_v37 = vadd.f32 %v3122_v18, %v882_v48  ;;  %2262 = vmatprep.mubr.f32.mxu0 %v1159_v3 }
 0x1d9   :  { %2263 = vmatmul.mubr.f32.gmra.mrb[40].mxu0 %v1160_v7  ;;  %v1162_v44 = vmax.f32 %v888_v30, 0.0 }
 0x1da   :  { %v1161_v56 = vmax.f32 %v883_v37, 0.0  ;;  %v2142_v8 = vpop.f32.mrb[44].mxu1 }
 0x1db   :  { %v898_v10 = vadd.f32 %v2142_v8, %v3122_v18  ;;  %v892_v52 = vpop.f32.mrb[45].mxu1 }
 0x1dc   :  { %v893_v23 = vadd.f32 %v3122_v18, %v892_v52  ;;  %2265 = vmatprep.mubr.f32.mxu0 %v1161_v56 }
 0x1dd   :  { %2266 = vmatmul.mubr.f32.gmra.mrb[42].mxu0 %v1162_v44  ;;  %v1164_v19 = vmax.f32 %v898_v10, 0.0 }
 0x1de   :  { %v1163_v6 = vmax.f32 %v893_v23, 0.0  ;;  %v2145_v39 = vpop.f32.mrb[46].mxu1 }
 0x1df   :  { %v908_v55 = vadd.f32 %v2145_v39, %v3122_v18  ;;  %v902_v33 = vpop.f32.mrb[47].mxu1 }
 0x1e0   :  { %v903_v5 = vadd.f32 %v3122_v18, %v902_v33  ;;  %2268 = vmatprep.mubr.f32.mxu0 %v1163_v6 }
 0x1e1   :  { %2269 = vmatmul.mubr.f32.gmra.mrb[44].mxu0 %v1164_v19  ;;  %v1166_v1 = vmax.f32 %v908_v55, 0.0 }
 0x1e2   :  { %v1165_v50 = vmax.f32 %v903_v5, 0.0  ;;  %v2148_v21 = vpop.f32.mrb[48].mxu1 }
 0x1e3   :  { %v918_v35 = vadd.f32 %v2148_v21, %v3122_v18  ;;  %v912_v16 = vpop.f32.mrb[49].mxu1 }
 0x1e4   :  { %v913_v51 = vadd.f32 %v3122_v18, %v912_v16  ;;  %2271 = vmatprep.mubr.f32.mxu0 %v1165_v50 }
 0x1e5   :  { %2272 = vmatmul.mubr.f32.gmra.mrb[46].mxu0 %v1166_v1  ;;  %v1168_v45 = vmax.f32 %v918_v35, 0.0 }
 0x1e6   :  { %v1167_v29 = vmax.f32 %v913_v51, 0.0  ;;  %v2151_v0 = vpop.f32.mrb[50].mxu1 }
 0x1e7   :  { %v928_v11 = vadd.f32 %v2151_v0, %v3122_v18  ;;  %v922_v60 = vpop.f32.mrb[51].mxu1 }
 0x1e8   :  { %v923_v12 = vadd.f32 %v3122_v18, %v922_v60  ;;  %2274 = vmatprep.mubr.f32.mxu0 %v1167_v29 }
 0x1e9   :  { %2275 = vmatmul.mubr.f32.gmra.mrb[48].mxu0 %v1168_v45  ;;  %v1170_v14 = vmax.f32 %v928_v11, 0.0 }
 0x1ea   :  { %v1169_v9 = vmax.f32 %v923_v12, 0.0  ;;  %v2154_v13 = vpop.f32.mrb[52].mxu1 }
 0x1eb   :  { %v938_v15 = vadd.f32 %v2154_v13, %v3122_v18  ;;  %v932_v17 = vpop.f32.mrb[53].mxu1 }
 0x1ec   :  { %v933_v20 = vadd.f32 %v3122_v18, %v932_v17  ;;  %2277 = vmatprep.mubr.f32.mxu0 %v1169_v9 }
 0x1ed   :  { %2278 = vmatmul.mubr.f32.gmra.mrb[50].mxu0 %v1170_v14  ;;  %v1172_v25 = vmax.f32 %v938_v15, 0.0 }
 0x1ee   :  { %v1171_v22 = vmax.f32 %v933_v20, 0.0  ;;  %v2157_v24 = vpop.f32.mrb[54].mxu1 }
 0x1ef   :  { %v948_v26 = vadd.f32 %v2157_v24, %v3122_v18  ;;  %v942_v27 = vpop.f32.mrb[55].mxu1 }
 0x1f0   :  { %v943_v28 = vadd.f32 %v3122_v18, %v942_v27  ;;  %2280 = vmatprep.mubr.f32.mxu0 %v1171_v22 }
 0x1f1   :  { %2281 = vmatmul.mubr.f32.gmra.mrb[52].mxu0 %v1172_v25  ;;  %v1174_v34 = vmax.f32 %v948_v26, 0.0 }
 0x1f2   :  { %v1173_v31 = vmax.f32 %v943_v28, 0.0  ;;  %v2160_v32 = vpop.f32.mrb[56].mxu1 }
 0x1f3   :  { %v958_v36 = vadd.f32 %v2160_v32, %v3122_v18  ;;  %v952_v40 = vpop.f32.mrb[57].mxu1 }
 0x1f4   :  { %v953_v41 = vadd.f32 %v3122_v18, %v952_v40  ;;  %2283 = vmatprep.mubr.f32.mxu0 %v1173_v31 }
 0x1f5   :  { %2284 = vmatmul.mubr.f32.gmra.mrb[54].mxu0 %v1174_v34  ;;  %v1176_v46 = vmax.f32 %v958_v36, 0.0 }
 0x1f6   :  { %v1175_v42 = vmax.f32 %v953_v41, 0.0  ;;  %v2163_v43 = vpop.f32.mrb[58].mxu1 }
 0x1f7   :  { %v968_v47 = vadd.f32 %v2163_v43, %v3122_v18  ;;  %v962_v49 = vpop.f32.mrb[59].mxu1 }
 0x1f8   :  { %v963_v53 = vadd.f32 %v3122_v18, %v962_v49  ;;  %2286 = vmatprep.mubr.f32.mxu0 %v1175_v42 }
 0x1f9   :  { %2287 = vmatmul.mubr.f32.gmra.mrb[56].mxu0 %v1176_v46  ;;  %v1178_v38 = vmax.f32 %v968_v47, 0.0 }
 0x1fa   :  { %v1177_v54 = vmax.f32 %v963_v53, 0.0  ;;  %v2166_v57 = vpop.f32.mrb[60].mxu1 }
 0x1fb   :  { %v978_v58 = vadd.f32 %v2166_v57, %v3122_v18  ;;  %v972_v59 = vpop.f32.mrb[61].mxu1 }
 0x1fc   :  { %v973_v61 = vadd.f32 %v3122_v18, %v972_v59  ;;  %2289 = vmatprep.mubr.f32.mxu0 %v1177_v54 }
 0x1fd   :  { %2290 = vmatmul.mubr.f32.gmra.mrb[58].mxu0 %v1178_v38  ;;  %v1180_v2 = vmax.f32 %v978_v58, 0.0 }
 0x1fe   :  { %v1179_v62 = vmax.f32 %v973_v61, 0.0  ;;  %v2169_v63 = vpop.f32.mrb[62].mxu1 }
 0x1ff   :  { %v988_v3 = vadd.f32 %v2169_v63, %v3122_v18  ;;  %v982_v4 = vpop.f32.mrb[63].mxu1 }
 0x200   :  { %v983_v7 = vadd.f32 %v3122_v18, %v982_v4  ;;  %2292 = vmatprep.mubr.f32.mxu0 %v1179_v62 }
 0x201   :  { %2293 = vmatmul.mubr.f32.gmra.mrb[60].mxu0 %v1180_v2  ;;  %v1182_v37 = vmax.f32 %v988_v3, 0.0 }
 0x202   :  { %v1181_v30 = vmax.f32 %v983_v7, 0.0  ;;  %v2172_v48 = vpop.f32.mrb[64].mxu1 }
 0x203   :  { %v998_v56 = vadd.f32 %v2172_v48, %v3122_v18  ;;  %v992_v8 = vpop.f32.mrb[65].mxu1 }
 0x204   :  { %v993_v44 = vadd.f32 %v3122_v18, %v992_v8  ;;  %2295 = vmatprep.mubr.f32.mxu0 %v1181_v30 }
 0x205   :  { %2296 = vmatmul.mubr.f32.gmra.mrb[62].mxu0 %v1182_v37  ;;  %v1184_v23 = vmax.f32 %v998_v56, 0.0 }
 0x206   :  { %v1183_v10 = vmax.f32 %v993_v44, 0.0  ;;  %v2175_v52 = vpop.f32.mrb[66].mxu1 }
 0x207   :  { %v1008_v6 = vadd.f32 %v2175_v52, %v3122_v18  ;;  %v1002_v39 = vpop.f32.mrb[67].mxu1 }
 0x208   :  { %v1003_v19 = vadd.f32 %v3122_v18, %v1002_v39  ;;  %2298 = vmatprep.mubr.f32.mxu0 %v1183_v10 }
 0x209   :  { %2299 = vmatmul.mubr.f32.gmra.mrb[64].mxu0 %v1184_v23  ;;  %v1186_v5 = vmax.f32 %v1008_v6, 0.0 }
 0x20a   :  { %v1185_v55 = vmax.f32 %v1003_v19, 0.0  ;;  %v2178_v33 = vpop.f32.mrb[68].mxu1 }
 0x20b   :  { %v1018_v50 = vadd.f32 %v2178_v33, %v3122_v18  ;;  %v1012_v21 = vpop.f32.mrb[69].mxu1 }
 0x20c   :  { %v1013_v1 = vadd.f32 %v3122_v18, %v1012_v21  ;;  %2301 = vmatprep.mubr.f32.mxu0 %v1185_v55 }
 0x20d   :  { %2302 = vmatmul.mubr.f32.gmra.mrb[66].mxu0 %v1186_v5  ;;  %v1188_v51 = vmax.f32 %v1018_v50, 0.0 }
 0x20e   :  { %v1187_v35 = vmax.f32 %v1013_v1, 0.0  ;;  %v2181_v16 = vpop.f32.mrb[70].mxu1 }
 0x20f   :  { %v1028_v29 = vadd.f32 %v2181_v16, %v3122_v18  ;;  %v1022_v0 = vpop.f32.mrb[71].mxu1 }
 0x210   :  { %v1023_v45 = vadd.f32 %v3122_v18, %v1022_v0  ;;  %2304 = vmatprep.mubr.f32.mxu0 %v1187_v35 }
 0x211   :  { %2305 = vmatmul.mubr.f32.gmra.mrb[68].mxu0 %v1188_v51  ;;  %v1190_v12 = vmax.f32 %v1028_v29, 0.0 }
 0x212   :  { %v1189_v11 = vmax.f32 %v1023_v45, 0.0  ;;  %v2184_v60 = vpop.f32.mrb[72].mxu1 }
 0x213   :  { %v1038_v9 = vadd.f32 %v2184_v60, %v3122_v18  ;;  %v1032_v13 = vpop.f32.mrb[73].mxu1 }
 0x214   :  { %v1033_v14 = vadd.f32 %v3122_v18, %v1032_v13  ;;  %2307 = vmatprep.mubr.f32.mxu0 %v1189_v11 }
 0x215   :  { %2308 = vmatmul.mubr.f32.gmra.mrb[70].mxu0 %v1190_v12  ;;  %v1192_v20 = vmax.f32 %v1038_v9, 0.0 }
 0x216   :  { %v1191_v15 = vmax.f32 %v1033_v14, 0.0  ;;  %v2187_v17 = vpop.f32.mrb[74].mxu1 }
 0x217   :  { %v1048_v22 = vadd.f32 %v2187_v17, %v3122_v18  ;;  %v1042_v24 = vpop.f32.mrb[75].mxu1 }
 0x218   :  { %v1043_v25 = vadd.f32 %v3122_v18, %v1042_v24  ;;  %2310 = vmatprep.mubr.f32.mxu0 %v1191_v15 }
 0x219   :  { %2311 = vmatmul.mubr.f32.gmra.mrb[72].mxu0 %v1192_v20  ;;  %v1194_v28 = vmax.f32 %v1048_v22, 0.0 }
 0x21a   :  { %v1193_v26 = vmax.f32 %v1043_v25, 0.0  ;;  %v2190_v27 = vpop.f32.mrb[76].mxu1  ;;  %v3191_v25 = vld [vmem:[%s3455_s6] ss:$0 sm:$0xff] }
 0x21b   :  { %v1058_v31 = vadd.f32 %v2190_v27, %v3122_v18  ;;  %v1052_v32 = vpop.f32.mrb[77].mxu1 }
 0x21c   :  { %v1053_v34 = vadd.f32 %v3122_v18, %v1052_v32  ;;  %2313 = vmatprep.mubr.f32.mxu0 %v1193_v26 }
 0x21d   :  { %2314 = vmatmul.mubr.f32.gmra.mrb[74].mxu0 %v1194_v28  ;;  %v1196_v41 = vmax.f32 %v1058_v31, 0.0 }
 0x21e   :  { %v1195_v36 = vmax.f32 %v1053_v34, 0.0  ;;  %v2193_v40 = vpop.f32.mrb[78].mxu1 }
 0x21f   :  { %v1068_v42 = vadd.f32 %v2193_v40, %v3122_v18  ;;  %v1062_v43 = vpop.f32.mrb[79].mxu1 }
 0x220   :  { %v1063_v46 = vadd.f32 %v3122_v18, %v1062_v43  ;;  %2316 = vmatprep.mubr.f32.mxu0 %v1195_v36 }
 0x221   :  { %2317 = vmatmul.mubr.f32.gmra.mrb[76].mxu0 %v1196_v41  ;;  %v1198_v53 = vmax.f32 %v1068_v42, 0.0 }
 0x222   :  { %v1197_v47 = vmax.f32 %v1063_v46, 0.0  ;;  %v2196_v49 = vpop.f32.mrb[80].mxu1 }
 0x223   :  { %v1078_v54 = vadd.f32 %v2196_v49, %v3122_v18  ;;  %v1072_v57 = vpop.f32.mrb[81].mxu1 }
 0x224   :  { %v1073_v38 = vadd.f32 %v3122_v18, %v1072_v57  ;;  %2319 = vmatprep.mubr.f32.mxu0 %v1197_v47 }
 0x225   :  { %2320 = vmatmul.mubr.f32.gmra.mrb[78].mxu0 %v1198_v53  ;;  %v1200_v61 = vmax.f32 %v1078_v54, 0.0 }
 0x226   :  { %v1199_v58 = vmax.f32 %v1073_v38, 0.0  ;;  %v2199_v59 = vpop.f32.mrb[82].mxu1 }
 0x227   :  { %v1088_v62 = vadd.f32 %v2199_v59, %v3122_v18  ;;  %v1082_v63 = vpop.f32.mrb[83].mxu1 }
 0x228   :  { %v1083_v2 = vadd.f32 %v3122_v18, %v1082_v63  ;;  %2322 = vmatprep.mubr.f32.mxu0 %v1199_v58 }
 0x229   :  { %2323 = vmatmul.mubr.f32.gmra.mrb[80].mxu0 %v1200_v61  ;;  %v1202_v7 = vmax.f32 %v1088_v62, 0.0 }
 0x22a   :  { %v1201_v3 = vmax.f32 %v1083_v2, 0.0  ;;  %v2202_v4 = vpop.f32.mrb[84].mxu1 }
 0x22b   :  { %v1098_v30 = vadd.f32 %v2202_v4, %v3122_v18  ;;  %v1092_v48 = vpop.f32.mrb[85].mxu1 }
 0x22c   :  { %v1093_v37 = vadd.f32 %v3122_v18, %v1092_v48  ;;  %2325 = vmatprep.mubr.f32.mxu0 %v1201_v3 }
 0x22d   :  { %2326 = vmatmul.mubr.f32.gmra.mrb[82].mxu0 %v1202_v7  ;;  %v1204_v44 = vmax.f32 %v1098_v30, 0.0 }
 0x22e   :  { %v1203_v56 = vmax.f32 %v1093_v37, 0.0  ;;  %v2205_v8 = vpop.f32.mrb[86].mxu1 }
 0x22f   :  { %v1108_v10 = vadd.f32 %v2205_v8, %v3122_v18  ;;  %v1102_v52 = vpop.f32.mrb[87].mxu1 }
 0x230   :  { %v1103_v23 = vadd.f32 %v3122_v18, %v1102_v52  ;;  %2328 = vmatprep.mubr.f32.mxu0 %v1203_v56 }
 0x231   :  { %2329 = vmatmul.mubr.f32.gmra.mrb[84].mxu0 %v1204_v44  ;;  %v1206_v19 = vmax.f32 %v1108_v10, 0.0 }
 0x232   :  { %v1205_v6 = vmax.f32 %v1103_v23, 0.0  ;;  %v2208_v39 = vpop.f32.mrb[88].mxu1 }
 0x233   :  { %v1118_v55 = vadd.f32 %v2208_v39, %v3122_v18  ;;  %v1112_v33 = vpop.f32.mrb[89].mxu1 }
 0x234   :  { %v1113_v5 = vadd.f32 %v3122_v18, %v1112_v33  ;;  %2331 = vmatprep.mubr.f32.mxu0 %v1205_v6 }
 0x235   :  { %2332 = vmatmul.mubr.f32.gmra.mrb[86].mxu0 %v1206_v19  ;;  %v1208_v1 = vmax.f32 %v1118_v55, 0.0 }
 0x236   :  { %v1207_v50 = vmax.f32 %v1113_v5, 0.0  ;;  %v2211_v21 = vpop.f32.mrb[90].mxu1 }
 0x237   :  { %v1128_v35 = vadd.f32 %v2211_v21, %v3122_v18  ;;  %v1122_v16 = vpop.f32.mrb[91].mxu1 }
 0x238   :  { %v1123_v51 = vadd.f32 %v3122_v18, %v1122_v16  ;;  %2334 = vmatprep.mubr.f32.mxu0 %v1207_v50 }
 0x239   :  { %2335 = vmatmul.mubr.f32.gmra.mrb[88].mxu0 %v1208_v1  ;;  %v1210_v45 = vmax.f32 %v1128_v35, 0.0 }
 0x23a   :  { %v1209_v29 = vmax.f32 %v1123_v51, 0.0  ;;  %v2214_v0 = vpop.f32.mrb[92].mxu1 }
 0x23b   :  { %v1138_v11 = vadd.f32 %v2214_v0, %v3122_v18  ;;  %v1132_v60 = vpop.f32.mrb[93].mxu1 }
 0x23c   :  { %v1133_v12 = vadd.f32 %v3122_v18, %v1132_v60  ;;  %2337 = vmatprep.mubr.f32.mxu0 %v1209_v29 }
 0x23d   :  { %2338 = vmatmul.mubr.f32.gmra.mrb[90].mxu0 %v1210_v45  ;;  %v1212_v14 = vmax.f32 %v1138_v11, 0.0 }
 0x23e   :  { %v1211_v9 = vmax.f32 %v1133_v12, 0.0  ;;  %v2217_v13 = vpop.f32.mrb[94].mxu1 }
 0x23f   :  { %v1148_v15 = vadd.f32 %v2217_v13, %v3122_v18  ;;  %v1142_v17 = vpop.f32.mrb[95].mxu1 }
 0x240   :  { %v1143_v20 = vadd.f32 %v3122_v18, %v1142_v17  ;;  %2340 = vmatprep.mubr.f32.mxu0 %v1211_v9 }
 0x241   :  { %2341 = vmatmul.mubr.f32.gmra.mrb[92].mxu0 %v1212_v14  ;;  %v1214_v24 = vmax.f32 %v1148_v15, 0.0 }
 0x242   :  { %v1213_v22 = vmax.f32 %v1143_v20, 0.0 }
 0x244   :  { %2343 = vmatprep.mubr.f32.mxu0 %v1213_v22 }
 0x245   :  { %2344 = vmatmul.mubr.f32.gmra.mrb[94].mxu0 %v1214_v24 }
 0x29c   :  { %v2252_v26 = vpop.f32.mrb[32].mxu0 }
 0x29d   :  { %v1310_v27 = vadd.f32 %v2252_v26, %v3191_v25  ;;  %v1304_v28 = vpop.f32.mrb[33].mxu0 }
 0x29e   :  { %v1305_v31 = vadd.f32 %v3191_v25, %v1304_v28 }
 0x29f   :  { %1624 = vst [vmem:[%s3456_s7 + $0x8] sm:$0xff] %v1310_v27 }
 0x2a0   :  { %1623 = vst [vmem:[%s3456_s7] sm:$0xff] %v1305_v31  ;;  %v2255_v18 = vpop.f32.mrb[34].mxu0 }
 0x2a1   :  { %v1320_v32 = vadd.f32 %v2255_v18, %v3191_v25  ;;  %v1314_v34 = vpop.f32.mrb[35].mxu0 }
 0x2a2   :  { %v1315_v36 = vadd.f32 %v3191_v25, %v1314_v34 }
 0x2a3   :  { %1626 = vst [vmem:[%s3456_s7 + $0x18] sm:$0xff] %v1320_v32 }
 0x2a4   :  { %1625 = vst [vmem:[%s3456_s7 + $0x10] sm:$0xff] %v1315_v36  ;;  %v2258_v40 = vpop.f32.mrb[36].mxu0 }
 0x2a5   :  { %v1330_v41 = vadd.f32 %v2258_v40, %v3191_v25  ;;  %v1324_v42 = vpop.f32.mrb[37].mxu0 }
 0x2a6   :  { %v1325_v43 = vadd.f32 %v3191_v25, %v1324_v42 }
 0x2a7   :  { %1628 = vst [vmem:[%s3456_s7 + $0x28] sm:$0xff] %v1330_v41 }
 0x2a8   :  { %1627 = vst [vmem:[%s3456_s7 + $0x20] sm:$0xff] %v1325_v43  ;;  %v2261_v46 = vpop.f32.mrb[38].mxu0 }
 0x2a9   :  { %v1340_v47 = vadd.f32 %v2261_v46, %v3191_v25  ;;  %v1334_v49 = vpop.f32.mrb[39].mxu0 }
 0x2aa   :  { %v1335_v53 = vadd.f32 %v3191_v25, %v1334_v49 }
 0x2ab   :  { %1630 = vst [vmem:[%s3456_s7 + $0x38] sm:$0xff] %v1340_v47 }
 0x2ac   :  { %1629 = vst [vmem:[%s3456_s7 + $0x30] sm:$0xff] %v1335_v53  ;;  %v2264_v54 = vpop.f32.mrb[40].mxu0 }
 0x2ad   :  { %v1350_v57 = vadd.f32 %v2264_v54, %v3191_v25  ;;  %v1344_v38 = vpop.f32.mrb[41].mxu0 }
 0x2ae   :  { %v1345_v58 = vadd.f32 %v3191_v25, %v1344_v38 }
 0x2af   :  { %1632 = vst [vmem:[%s3456_s7 + $0x48] sm:$0xff] %v1350_v57 }
 0x2b0   :  { %1631 = vst [vmem:[%s3456_s7 + $0x40] sm:$0xff] %v1345_v58  ;;  %v2267_v59 = vpop.f32.mrb[42].mxu0 }
 0x2b1   :  { %v1360_v61 = vadd.f32 %v2267_v59, %v3191_v25  ;;  %v1354_v62 = vpop.f32.mrb[43].mxu0 }
 0x2b2   :  { %v1355_v63 = vadd.f32 %v3191_v25, %v1354_v62 }
 0x2b3   :  { %1634 = vst [vmem:[%s3456_s7 + $0x58] sm:$0xff] %v1360_v61 }
 0x2b4   :  { %1633 = vst [vmem:[%s3456_s7 + $0x50] sm:$0xff] %v1355_v63  ;;  %v2270_v2 = vpop.f32.mrb[44].mxu0 }
 0x2b5   :  { %v1370_v3 = vadd.f32 %v2270_v2, %v3191_v25  ;;  %v1364_v4 = vpop.f32.mrb[45].mxu0 }
 0x2b6   :  { %v1365_v7 = vadd.f32 %v3191_v25, %v1364_v4 }
 0x2b7   :  { %1636 = vst [vmem:[%s3456_s7 + $0x68] sm:$0xff] %v1370_v3 }
 0x2b8   :  { %1635 = vst [vmem:[%s3456_s7 + $0x60] sm:$0xff] %v1365_v7  ;;  %v2273_v30 = vpop.f32.mrb[46].mxu0 }
 0x2b9   :  { %v1380_v48 = vadd.f32 %v2273_v30, %v3191_v25  ;;  %v1374_v37 = vpop.f32.mrb[47].mxu0 }
 0x2ba   :  { %v1375_v56 = vadd.f32 %v3191_v25, %v1374_v37 }
 0x2bb   :  { %1638 = vst [vmem:[%s3456_s7 + $0x78] sm:$0xff] %v1380_v48 }
 0x2bc   :  { %1637 = vst [vmem:[%s3456_s7 + $0x70] sm:$0xff] %v1375_v56  ;;  %v2276_v8 = vpop.f32.mrb[48].mxu0 }
 0x2bd   :  { %v1390_v44 = vadd.f32 %v2276_v8, %v3191_v25  ;;  %v1384_v10 = vpop.f32.mrb[49].mxu0 }
 0x2be   :  { %v1385_v52 = vadd.f32 %v3191_v25, %v1384_v10 }
 0x2bf   :  { %1640 = vst [vmem:[%s3456_s7 + $0x88] sm:$0xff] %v1390_v44 }
 0x2c0   :  { %1639 = vst [vmem:[%s3456_s7 + $0x80] sm:$0xff] %v1385_v52  ;;  %v2279_v23 = vpop.f32.mrb[50].mxu0 }
 0x2c1   :  { %v1400_v6 = vadd.f32 %v2279_v23, %v3191_v25  ;;  %v1394_v39 = vpop.f32.mrb[51].mxu0 }
 0x2c2   :  { %v1395_v19 = vadd.f32 %v3191_v25, %v1394_v39 }
 0x2c3   :  { %1642 = vst [vmem:[%s3456_s7 + $0x98] sm:$0xff] %v1400_v6 }
 0x2c4   :  { %1641 = vst [vmem:[%s3456_s7 + $0x90] sm:$0xff] %v1395_v19  ;;  %v2282_v55 = vpop.f32.mrb[52].mxu0 }
 0x2c5   :  { %v1410_v33 = vadd.f32 %v2282_v55, %v3191_v25  ;;  %v1404_v5 = vpop.f32.mrb[53].mxu0 }
 0x2c6   :  { %v1405_v50 = vadd.f32 %v3191_v25, %v1404_v5 }
 0x2c7   :  { %1644 = vst [vmem:[%s3456_s7 + $0xa8] sm:$0xff] %v1410_v33 }
 0x2c8   :  { %1643 = vst [vmem:[%s3456_s7 + $0xa0] sm:$0xff] %v1405_v50  ;;  %v2285_v21 = vpop.f32.mrb[54].mxu0 }
 0x2c9   :  { %v1420_v1 = vadd.f32 %v2285_v21, %v3191_v25  ;;  %v1414_v35 = vpop.f32.mrb[55].mxu0 }
 0x2ca   :  { %v1415_v16 = vadd.f32 %v3191_v25, %v1414_v35 }
 0x2cb   :  { %1646 = vst [vmem:[%s3456_s7 + $0xb8] sm:$0xff] %v1420_v1 }
 0x2cc   :  { %1645 = vst [vmem:[%s3456_s7 + $0xb0] sm:$0xff] %v1415_v16  ;;  %v2288_v51 = vpop.f32.mrb[56].mxu0 }
 0x2cd   :  { %v1430_v29 = vadd.f32 %v2288_v51, %v3191_v25  ;;  %v1424_v0 = vpop.f32.mrb[57].mxu0 }
 0x2ce   :  { %v1425_v45 = vadd.f32 %v3191_v25, %v1424_v0 }
 0x2cf   :  { %1648 = vst [vmem:[%s3456_s7 + $0xc8] sm:$0xff] %v1430_v29 }
 0x2d0   :  { %1647 = vst [vmem:[%s3456_s7 + $0xc0] sm:$0xff] %v1425_v45  ;;  %v2291_v11 = vpop.f32.mrb[58].mxu0 }
 0x2d1   :  { %v1440_v60 = vadd.f32 %v2291_v11, %v3191_v25  ;;  %v1434_v12 = vpop.f32.mrb[59].mxu0 }
 0x2d2   :  { %v1435_v9 = vadd.f32 %v3191_v25, %v1434_v12 }
 0x2d3   :  { %1650 = vst [vmem:[%s3456_s7 + $0xd8] sm:$0xff] %v1440_v60 }
 0x2d4   :  { %1649 = vst [vmem:[%s3456_s7 + $0xd0] sm:$0xff] %v1435_v9  ;;  %v2294_v13 = vpop.f32.mrb[60].mxu0 }
 0x2d5   :  { %v1450_v14 = vadd.f32 %v2294_v13, %v3191_v25  ;;  %v1444_v15 = vpop.f32.mrb[61].mxu0 }
 0x2d6   :  { %v1445_v17 = vadd.f32 %v3191_v25, %v1444_v15 }
 0x2d7   :  { %1652 = vst [vmem:[%s3456_s7 + $0xe8] sm:$0xff] %v1450_v14 }
 0x2d8   :  { %1651 = vst [vmem:[%s3456_s7 + $0xe0] sm:$0xff] %v1445_v17  ;;  %v2297_v20 = vpop.f32.mrb[62].mxu0 }
 0x2d9   :  { %v1460_v22 = vadd.f32 %v2297_v20, %v3191_v25  ;;  %v1454_v24 = vpop.f32.mrb[63].mxu0 }
 0x2da   :  { %v1455_v26 = vadd.f32 %v3191_v25, %v1454_v24 }
 0x2db   :  { %1654 = vst [vmem:[%s3456_s7 + $0xf8] sm:$0xff] %v1460_v22 }
 0x2dc   :  { %1653 = vst [vmem:[%s3456_s7 + $0xf0] sm:$0xff] %v1455_v26  ;;  %v2300_v27 = vpop.f32.mrb[64].mxu0 }
 0x2dd   :  { %v1470_v28 = vadd.f32 %v2300_v27, %v3191_v25  ;;  %v1464_v31 = vpop.f32.mrb[65].mxu0 }
 0x2de   :  { %v1465_v18 = vadd.f32 %v3191_v25, %v1464_v31 }
 0x2df   :  { %1656 = vst [vmem:[%s3456_s7 + $0x108] sm:$0xff] %v1470_v28 }
 0x2e0   :  { %1655 = vst [vmem:[%s3456_s7 + $0x100] sm:$0xff] %v1465_v18  ;;  %v2303_v32 = vpop.f32.mrb[66].mxu0 }
 0x2e1   :  { %v1480_v34 = vadd.f32 %v2303_v32, %v3191_v25  ;;  %v1474_v36 = vpop.f32.mrb[67].mxu0 }
 0x2e2   :  { %v1475_v40 = vadd.f32 %v3191_v25, %v1474_v36 }
 0x2e3   :  { %1658 = vst [vmem:[%s3456_s7 + $0x118] sm:$0xff] %v1480_v34 }
 0x2e4   :  { %1657 = vst [vmem:[%s3456_s7 + $0x110] sm:$0xff] %v1475_v40  ;;  %v2306_v41 = vpop.f32.mrb[68].mxu0 }
 0x2e5   :  { %v1490_v42 = vadd.f32 %v2306_v41, %v3191_v25  ;;  %v1484_v43 = vpop.f32.mrb[69].mxu0 }
 0x2e6   :  { %v1485_v46 = vadd.f32 %v3191_v25, %v1484_v43 }
 0x2e7   :  { %1660 = vst [vmem:[%s3456_s7 + $0x128] sm:$0xff] %v1490_v42 }
 0x2e8   :  { %1659 = vst [vmem:[%s3456_s7 + $0x120] sm:$0xff] %v1485_v46  ;;  %v2309_v47 = vpop.f32.mrb[70].mxu0 }
 0x2e9   :  { %v1500_v49 = vadd.f32 %v2309_v47, %v3191_v25  ;;  %v1494_v53 = vpop.f32.mrb[71].mxu0 }
 0x2ea   :  { %v1495_v54 = vadd.f32 %v3191_v25, %v1494_v53 }
 0x2eb   :  { %1662 = vst [vmem:[%s3456_s7 + $0x138] sm:$0xff] %v1500_v49 }
 0x2ec   :  { %1661 = vst [vmem:[%s3456_s7 + $0x130] sm:$0xff] %v1495_v54  ;;  %v2312_v57 = vpop.f32.mrb[72].mxu0 }
 0x2ed   :  { %v1510_v38 = vadd.f32 %v2312_v57, %v3191_v25  ;;  %v1504_v58 = vpop.f32.mrb[73].mxu0 }
 0x2ee   :  { %v1505_v59 = vadd.f32 %v3191_v25, %v1504_v58 }
 0x2ef   :  { %1664 = vst [vmem:[%s3456_s7 + $0x148] sm:$0xff] %v1510_v38 }
 0x2f0   :  { %1663 = vst [vmem:[%s3456_s7 + $0x140] sm:$0xff] %v1505_v59  ;;  %v2315_v61 = vpop.f32.mrb[74].mxu0 }
 0x2f1   :  { %v1520_v62 = vadd.f32 %v2315_v61, %v3191_v25  ;;  %v1514_v63 = vpop.f32.mrb[75].mxu0 }
 0x2f2   :  { %v1515_v2 = vadd.f32 %v3191_v25, %v1514_v63 }
 0x2f3   :  { %1666 = vst [vmem:[%s3456_s7 + $0x158] sm:$0xff] %v1520_v62 }
 0x2f4   :  { %1665 = vst [vmem:[%s3456_s7 + $0x150] sm:$0xff] %v1515_v2  ;;  %v2318_v3 = vpop.f32.mrb[76].mxu0 }
 0x2f5   :  { %v1530_v4 = vadd.f32 %v2318_v3, %v3191_v25  ;;  %v1524_v7 = vpop.f32.mrb[77].mxu0 }
 0x2f6   :  { %v1525_v30 = vadd.f32 %v3191_v25, %v1524_v7 }
 0x2f7   :  { %1668 = vst [vmem:[%s3456_s7 + $0x168] sm:$0xff] %v1530_v4 }
 0x2f8   :  { %1667 = vst [vmem:[%s3456_s7 + $0x160] sm:$0xff] %v1525_v30  ;;  %v2321_v48 = vpop.f32.mrb[78].mxu0 }
 0x2f9   :  { %v1540_v37 = vadd.f32 %v2321_v48, %v3191_v25  ;;  %v1534_v56 = vpop.f32.mrb[79].mxu0 }
 0x2fa   :  { %v1535_v8 = vadd.f32 %v3191_v25, %v1534_v56 }
 0x2fb   :  { %1670 = vst [vmem:[%s3456_s7 + $0x178] sm:$0xff] %v1540_v37 }
 0x2fc   :  { %1669 = vst [vmem:[%s3456_s7 + $0x170] sm:$0xff] %v1535_v8  ;;  %v2324_v44 = vpop.f32.mrb[80].mxu0 }
 0x2fd   :  { %v1550_v10 = vadd.f32 %v2324_v44, %v3191_v25  ;;  %v1544_v52 = vpop.f32.mrb[81].mxu0 }
 0x2fe   :  { %v1545_v23 = vadd.f32 %v3191_v25, %v1544_v52 }
 0x2ff   :  { %1672 = vst [vmem:[%s3456_s7 + $0x188] sm:$0xff] %v1550_v10 }
 0x300   :  { %1671 = vst [vmem:[%s3456_s7 + $0x180] sm:$0xff] %v1545_v23  ;;  %v2327_v6 = vpop.f32.mrb[82].mxu0 }
 0x301   :  { %v1560_v39 = vadd.f32 %v2327_v6, %v3191_v25  ;;  %v1554_v19 = vpop.f32.mrb[83].mxu0 }
 0x302   :  { %v1555_v55 = vadd.f32 %v3191_v25, %v1554_v19 }
 0x303   :  { %1674 = vst [vmem:[%s3456_s7 + $0x198] sm:$0xff] %v1560_v39 }
 0x304   :  { %1673 = vst [vmem:[%s3456_s7 + $0x190] sm:$0xff] %v1555_v55  ;;  %v2330_v33 = vpop.f32.mrb[84].mxu0 }
 0x305   :  { %v1570_v5 = vadd.f32 %v2330_v33, %v3191_v25  ;;  %v1564_v50 = vpop.f32.mrb[85].mxu0 }
 0x306   :  { %v1565_v21 = vadd.f32 %v3191_v25, %v1564_v50 }
 0x307   :  { %1676 = vst [vmem:[%s3456_s7 + $0x1a8] sm:$0xff] %v1570_v5 }
 0x308   :  { %1675 = vst [vmem:[%s3456_s7 + $0x1a0] sm:$0xff] %v1565_v21  ;;  %v2333_v1 = vpop.f32.mrb[86].mxu0 }
 0x309   :  { %v1580_v35 = vadd.f32 %v2333_v1, %v3191_v25  ;;  %v1574_v16 = vpop.f32.mrb[87].mxu0 }
 0x30a   :  { %v1575_v51 = vadd.f32 %v3191_v25, %v1574_v16 }
 0x30b   :  { %1678 = vst [vmem:[%s3456_s7 + $0x1b8] sm:$0xff] %v1580_v35 }
 0x30c   :  { %1677 = vst [vmem:[%s3456_s7 + $0x1b0] sm:$0xff] %v1575_v51  ;;  %v2336_v29 = vpop.f32.mrb[88].mxu0 }
 0x30d   :  { %v1590_v0 = vadd.f32 %v2336_v29, %v3191_v25  ;;  %v1584_v45 = vpop.f32.mrb[89].mxu0 }
 0x30e   :  { %v1585_v11 = vadd.f32 %v3191_v25, %v1584_v45 }
 0x30f   :  { %1680 = vst [vmem:[%s3456_s7 + $0x1c8] sm:$0xff] %v1590_v0 }
 0x310   :  { %1679 = vst [vmem:[%s3456_s7 + $0x1c0] sm:$0xff] %v1585_v11  ;;  %v2339_v60 = vpop.f32.mrb[90].mxu0 }
 0x311   :  { %v1600_v12 = vadd.f32 %v2339_v60, %v3191_v25  ;;  %v1594_v9 = vpop.f32.mrb[91].mxu0 }
 0x312   :  { %v1595_v13 = vadd.f32 %v3191_v25, %v1594_v9 }
 0x313   :  { %1682 = vst [vmem:[%s3456_s7 + $0x1d8] sm:$0xff] %v1600_v12 }
 0x314   :  { %1681 = vst [vmem:[%s3456_s7 + $0x1d0] sm:$0xff] %v1595_v13  ;;  %v2342_v14 = vpop.f32.mrb[92].mxu0 }
 0x315   :  { %v1610_v15 = vadd.f32 %v2342_v14, %v3191_v25  ;;  %v1604_v17 = vpop.f32.mrb[93].mxu0 }
 0x316   :  { %v1605_v20 = vadd.f32 %v3191_v25, %v1604_v17 }
 0x317   :  { %1684 = vst [vmem:[%s3456_s7 + $0x1e8] sm:$0xff] %v1610_v15 }
 0x318   :  { %1683 = vst [vmem:[%s3456_s7 + $0x1e0] sm:$0xff] %v1605_v20  ;;  %v2345_v22 = vpop.f32.mrb[94].mxu0 }
 0x319   :  { %v1620_v24 = vadd.f32 %v2345_v22, %v3191_v25  ;;  %v1614_v26 = vpop.f32.mrb[95].mxu0 }
 0x31a   :  { %v1615_v27 = vadd.f32 %v3191_v25, %v1614_v26 }
 0x31b   :  { %1686 = vst [vmem:[%s3456_s7 + $0x1f8] sm:$0xff] %v1620_v24 }
 0x31c   :  { %1685 = vst [vmem:[%s3456_s7 + $0x1f0] sm:$0xff] %v1615_v27 }

</bundles_post_ra>
